<compile_context>
chip_gen: v5e
topology: v5e:2x2
jax: 0.10.0
libtpu: 0.0.40
codegen_flags: <defaults>
</compile_context>

<pallas_src>
import jax
import jax.numpy as jnp
from jax import lax
from jax.experimental import pallas as pl
from jax.experimental.pallas import tpu as pltpu

_INV_SQRT2 = 0.7071067811865476  # 1/sqrt(2), exact-erf GELU (matches nn.GELU() default)


def _mlp_kernel(x_ref, w1_ref, b1_ref, w2_ref, b2_ref, o_ref):
    # One row-tile of tokens; both matmuls + exact (erf) GELU fused in-kernel.
    # Matmul operands stay in native dtype (bf16 path on MXU); accumulation in f32.
    h = jnp.dot(x_ref[...], w1_ref[...], preferred_element_type=jnp.float32)
    h = h + b1_ref[...].astype(jnp.float32)
    h = 0.5 * h * (1.0 + lax.erf(h * _INV_SQRT2))
    # TODO(synk): dropout omitted (drop=0.0 / eval mode -> identity).
    h = h.astype(w2_ref.dtype)  # back to native dtype for the second MXU matmul
    o = jnp.dot(h, w2_ref[...], preferred_element_type=jnp.float32)
    o = o + b2_ref[...].astype(jnp.float32)
    o_ref[...] = o.astype(o_ref.dtype)


def _round_up(a, m):
    return (a + m - 1) // m * m


def mlp_pallas(x, w1, b1, w2, b2, *, tm=256, vmem_limit_bytes=56 * 1024 * 1024):
    """x: (B, N, C). w1: (C, H), b1: (H,), w2: (H, O), b2: (O,).

    Weights are stored (in, hidden)/(hidden, out), i.e. transposed relative to
    PyTorch nn.Linear's (out, in) layout.
    """
    B, N, C = x.shape
    H = w1.shape[1]
    O = w2.shape[1]
    M = B * N
    assert tm % 8 == 0, "row tile must be a sublane multiple"

    # Lane-dense padding: channel dims to multiples of 128, rows to a tile multiple.
    Cp = _round_up(C, 128)
    Hp = _round_up(H, 128)
    Op = _round_up(O, 128)
    Mp = _round_up(M, tm)

    x2 = x.reshape(M, C)
    if (Mp, Cp) != (M, C):
        x2 = jnp.pad(x2, ((0, Mp - M), (0, Cp - C)))
    w1p = jnp.pad(w1, ((0, Cp - C), (0, Hp - H))) if (Cp, Hp) != (C, H) else w1
    w2p = jnp.pad(w2, ((0, Hp - H), (0, Op - O))) if (Hp, Op) != (H, O) else w2
    b1p = jnp.pad(b1, (0, Hp - H)).reshape(1, Hp)
    b2p = jnp.pad(b2, (0, Op - O)).reshape(1, Op)

    out2 = pl.pallas_call(
        _mlp_kernel,
        out_shape=jax.ShapeDtypeStruct((Mp, Op), x.dtype),
        grid_spec=pltpu.PrefetchScalarGridSpec(
            num_scalar_prefetch=0,
            grid=(Mp // tm,),
            in_specs=[
                pl.BlockSpec((tm, Cp), lambda i: (i, 0)),   # x row-tile
                pl.BlockSpec((Cp, Hp), lambda i: (0, 0)),   # W1 (resident, invariant)
                pl.BlockSpec((1, Hp), lambda i: (0, 0)),    # b1
                pl.BlockSpec((Hp, Op), lambda i: (0, 0)),   # W2 (resident, invariant)
                pl.BlockSpec((1, Op), lambda i: (0, 0)),    # b2
            ],
            out_specs=pl.BlockSpec((tm, Op), lambda i: (i, 0)),
        ),
        compiler_params=pltpu.CompilerParams(
            dimension_semantics=("parallel",),      # shards rows across TCs on v7x
            vmem_limit_bytes=vmem_limit_bytes,
        ),
    )(x2, w1p, b1p, w2p, b2p)

    return out2[:M, :O].reshape(B, N, O)


def mlp_reference(x, w1, b1, w2, b2):
    h = jnp.einsum("bnc,ch->bnh", x, w1) + b1
    h = 0.5 * h * (1.0 + lax.erf(h * _INV_SQRT2))
    return jnp.einsum("bnh,ho->bno", h, w2) + b2


if __name__ == "__main__":
    B, N = 2, 8                 # batch, tokens
    in_features = 32
    hidden_features = 64
    out_features = 32

    key = jax.random.PRNGKey(0)
    kx, kw1, kb1, kw2, kb2 = jax.random.split(key, 5)

    x = jax.random.normal(kx, (B, N, in_features), dtype=jnp.float32)
    # Deterministic init (PyTorch nn.Linear stores (out, in); we store transposed).
    w1 = 0.02 * jax.random.normal(kw1, (in_features, hidden_features), dtype=jnp.float32)
    b1 = 0.01 * jax.random.normal(kb1, (hidden_features,), dtype=jnp.float32)
    w2 = 0.02 * jax.random.normal(kw2, (hidden_features, out_features), dtype=jnp.float32)
    b2 = 0.01 * jax.random.normal(kb2, (out_features,), dtype=jnp.float32)

    out = mlp_pallas(x, w1, b1, w2, b2)
    out = jax.block_until_ready(out)

    ref = mlp_reference(x, w1, b1, w2, b2)
    assert out.shape == (B, N, out_features)
    assert jnp.allclose(out, ref, atol=1e-5, rtol=1e-5), "mismatch vs reference"
    print("KERNEL_OK")
</pallas_src>

<mosaic_0001>
module attributes {stable_mosaic.version = 11 : i64} {
  func.func @_mlp_kernel(%arg0: i32, %arg1: memref<256x128xf32, #tpu.memory_space<vmem>>, %arg2: memref<128x128xf32, #tpu.memory_space<vmem>>, %arg3: memref<1x128xf32, #tpu.memory_space<vmem>>, %arg4: memref<128x128xf32, #tpu.memory_space<vmem>>, %arg5: memref<1x128xf32, #tpu.memory_space<vmem>>, %arg6: memref<256x128xf32, #tpu.memory_space<vmem>>) attributes {dimension_semantics = [#tpu.dimension_semantics<parallel>], iteration_bounds = array<i64: 1>, scalar_prefetch = 0 : i64, scratch_operands = 0 : i64, tpu.core_type = #tpu.core_type<tc>, window_params = [{transform_indices = @transform_0, window_bounds = array<i64: 256, 128>}, {pipeline_mode = #tpu.pipeline_mode<synchronous>, transform_indices = @transform_1, window_bounds = array<i64: 128, 128>}, {pipeline_mode = #tpu.pipeline_mode<synchronous>, transform_indices = @transform_2, window_bounds = array<i64: 1, 128>}, {pipeline_mode = #tpu.pipeline_mode<synchronous>, transform_indices = @transform_3, window_bounds = array<i64: 128, 128>}, {pipeline_mode = #tpu.pipeline_mode<synchronous>, transform_indices = @transform_4, window_bounds = array<i64: 1, 128>}, {transform_indices = @transform_5, window_bounds = array<i64: 256, 128>}]} {
    %c0 = arith.constant 0 : index
    %c0_0 = arith.constant 0 : index
    %0 = vector.load %arg1[%c0, %c0_0] : memref<256x128xf32, #tpu.memory_space<vmem>>, vector<256x128xf32>
    %c0_1 = arith.constant 0 : index
    %c0_2 = arith.constant 0 : index
    %1 = vector.load %arg2[%c0_1, %c0_2] : memref<128x128xf32, #tpu.memory_space<vmem>>, vector<128x128xf32>
    %cst = arith.constant dense<0.000000e+00> : vector<256x128xf32>
    %2 = tpu.matmul %0, %1, %cst {dimension_numbers = #tpu.dot_dimension_numbers<[1], [0], [0], [1], [0, 0, 1, 1], [], []>} : vector<256x128xf32>, vector<128x128xf32>, vector<256x128xf32> -> vector<256x128xf32>
    %c0_3 = arith.constant 0 : index
    %c0_4 = arith.constant 0 : index
    %3 = vector.load %arg3[%c0_3, %c0_4] : memref<1x128xf32, #tpu.memory_space<vmem>>, vector<1x128xf32>
    %4 = vector.broadcast %3 : vector<1x128xf32> to vector<256x128xf32>
    %5 = arith.addf %2, %4 : vector<256x128xf32>
    %cst_5 = arith.constant 5.000000e-01 : f32
    %6 = vector.broadcast %cst_5 : f32 to vector<256x128xf32>
    %7 = arith.mulf %6, %5 : vector<256x128xf32>
    %cst_6 = arith.constant 0.707106769 : f32
    %8 = vector.broadcast %cst_6 : f32 to vector<256x128xf32>
    %9 = arith.mulf %5, %8 : vector<256x128xf32>
    %10 = math.erf %9 : vector<256x128xf32>
    %cst_7 = arith.constant 1.000000e+00 : f32
    %11 = vector.broadcast %cst_7 : f32 to vector<256x128xf32>
    %12 = arith.addf %11, %10 : vector<256x128xf32>
    %13 = arith.mulf %7, %12 : vector<256x128xf32>
    %c0_8 = arith.constant 0 : index
    %c0_9 = arith.constant 0 : index
    %14 = vector.load %arg4[%c0_8, %c0_9] : memref<128x128xf32, #tpu.memory_space<vmem>>, vector<128x128xf32>
    %cst_10 = arith.constant dense<0.000000e+00> : vector<256x128xf32>
    %15 = tpu.matmul %13, %14, %cst_10 {dimension_numbers = #tpu.dot_dimension_numbers<[1], [0], [0], [1], [0, 0, 1, 1], [], []>} : vector<256x128xf32>, vector<128x128xf32>, vector<256x128xf32> -> vector<256x128xf32>
    %c0_11 = arith.constant 0 : index
    %c0_12 = arith.constant 0 : index
    %16 = vector.load %arg5[%c0_11, %c0_12] : memref<1x128xf32, #tpu.memory_space<vmem>>, vector<1x128xf32>
    %17 = vector.broadcast %16 : vector<1x128xf32> to vector<256x128xf32>
    %18 = arith.addf %15, %17 : vector<256x128xf32>
    %c0_13 = arith.constant 0 : index
    %c0_14 = arith.constant 0 : index
    %19 = vector.load %arg6[%c0_13, %c0_14] : memref<256x128xf32, #tpu.memory_space<vmem>>, vector<256x128xf32>
    tpu.vector_store %arg6[%c0_13, %c0_14], %18 {strides = array<i32>} : memref<256x128xf32, #tpu.memory_space<vmem>>, vector<256x128xf32>,
    return
  }
  func.func @transform_0(%arg0: i32) -> (i32, i32) {
    %c0_i32 = arith.constant 0 : i32
    %c0_i32_0 = arith.constant 0 : i32
    return %arg0, %c0_i32 : i32, i32
  }
  func.func @transform_1(%arg0: i32) -> (i32, i32) {
    %c0_i32 = arith.constant 0 : i32
    %c0_i32_0 = arith.constant 0 : i32
    %c0_i32_1 = arith.constant 0 : i32
    return %c0_i32, %c0_i32_0 : i32, i32
  }
  func.func @transform_2(%arg0: i32) -> (i32, i32) {
    %c0_i32 = arith.constant 0 : i32
    %c0_i32_0 = arith.constant 0 : i32
    %c0_i32_1 = arith.constant 0 : i32
    return %c0_i32, %c0_i32_0 : i32, i32
  }
  func.func @transform_3(%arg0: i32) -> (i32, i32) {
    %c0_i32 = arith.constant 0 : i32
    %c0_i32_0 = arith.constant 0 : i32
    %c0_i32_1 = arith.constant 0 : i32
    return %c0_i32, %c0_i32_0 : i32, i32
  }
  func.func @transform_4(%arg0: i32) -> (i32, i32) {
    %c0_i32 = arith.constant 0 : i32
    %c0_i32_0 = arith.constant 0 : i32
    %c0_i32_1 = arith.constant 0 : i32
    return %c0_i32, %c0_i32_0 : i32, i32
  }
  func.func @transform_5(%arg0: i32) -> (i32, i32) {
    %c0_i32 = arith.constant 0 : i32
    %c0_i32_0 = arith.constant 0 : i32
    return %arg0, %c0_i32 : i32, i32
  }
}

</mosaic_0001>

<bundles_post_ra>
// kernel: tpu_custom_call.1
= control target key start
LH: loop header
LB: loop body
LE: loop exit
PB: predicated region body
PF: predicated region fallthrough
CT: control target
= control target key end

     0   :  { %10 = vsyncpa [#allocation3], 0  ;;  %s3440_s0 = inlined_call_operand.hbm [shape: f32[256,128], index: 0, kind: input, shape index: {}]   ;;  %s3441_s1 = inlined_call_operand.hbm [shape: f32[128,128], index: 1, kind: input, shape index: {}]   ;;  %s3442_s2 = inlined_call_operand.vmem [shape: f32[1,128], index: 2, kind: input, shape index: {}]   ;;  %s3443_s3 = inlined_call_operand.hbm [shape: f32[128,128], index: 3, kind: input, shape index: {}]   ;;  %s3444_s4 = inlined_call_operand.vmem [shape: f32[1,128], index: 4, kind: input, shape index: {}]   ;;  %s3445_s5 = inlined_call_operand.hbm [shape: f32[256,128], index: 5, kind: output, shape index: {}]  }
   0x1   :  { %11 = vsyncpa [#allocation6], 0 }
   0x2   :  { %12 = vsyncpa [#allocation4], 0  ;;  %s30_s20 = sshll.u32 %s3441_s1, 4  ;;  %s2065_s21 = smov [#allocation5]   ;;  %s31_s20 = int_to_ptr.hbm [resolvable:$true] %s30_s20 }
   0x3   :  { %s32_s22 = sshll.u32 %s2065_s21, 4  ;;  %s17_s25 = sshll.u32 %s3440_s0, 4  ;;  %s33_s22 = int_to_ptr.vmem [resolvable:$true] %s32_s22  ;;  %s18_s25 = int_to_ptr.hbm [resolvable:$true] %s17_s25 }
   0x4   :  { %s2066_s26 = smov 128   ;;  %s2067_s27 = smov 8  }
   0x5   :  { %38 = dma.hbm_to_vmem [thread:$0]  %s31_s20, 2048, %s33_s22, [#allocation6], %s2066_s26, %s2066_s26, %s2067_s27  }
   0x6   :  { %s2068_s28 = smov [#allocation2]   ;;  %s45_s1 = sshll.u32 %s3443_s3, 4  ;;  %s46_s1 = int_to_ptr.hbm [resolvable:$true] %s45_s1 }
   0x7   :  { %s19_s29 = sshll.u32 %s2068_s28, 4  ;;  %s2069_s0 = smov [#allocation7]   ;;  %s20_s29 = int_to_ptr.vmem [resolvable:$true] %s19_s29 }
   0x8   :  { %25 = dma.hbm_to_vmem [thread:$0]  %s18_s25, 4096, %s20_s29, [#allocation3], %s2066_s26, %s2066_s26, %s2067_s27  }
   0x9   :  { %s47_s7 = sshll.u32 %s2069_s0, 4  ;;  %s48_s7 = int_to_ptr.vmem [resolvable:$true] %s47_s7 }
   0xa   :  { %53 = dma.hbm_to_vmem [thread:$0]  %s46_s1, 2048, %s48_s7, [#allocation6], %s2066_s26, %s2066_s26, %s2067_s27  }
   0xb   :  { %2059 = dma.done.wait [#allocation3], 4096  }
   0xc   :  { %2060 = vsyncadd [#allocation3], 4294963200 }
   0xd   :  { %2061 = dma.done.wait [#allocation6], 4096  }
   0xe   :  { %2062 = vsyncadd [#allocation6], 4294963200  ;;  %v115_v0 = vld [vmem:[#allocation5 + $0x78] sm:$0xff]  ;;  %v114_v1 = vld [vmem:[#allocation5 + $0x70] sm:$0xff]  ;;  %s1812_s15 = sshll.u32 %s3445_s5, 4  ;;  %s1813_s15 = int_to_ptr.hbm [resolvable:$true] %s1812_s15 }
   0xf   :  { %120 = vmatpush.msra.mxu0 %v115_v0  ;;  %1858 = vmatpush.msra.mxu2 %v115_v0  ;;  %v113_v2 = vld [vmem:[#allocation5 + $0x68] sm:$0xff]  ;;  %v112_v3 = vld [vmem:[#allocation5 + $0x60] sm:$0xff]  ;;  %v111_v4 = vld [vmem:[#allocation5 + $0x58] sm:$0xff] }
  0x10   :  { %v110_v5 = vld [vmem:[#allocation5 + $0x50] sm:$0xff]  ;;  %v109_v6 = vld [vmem:[#allocation5 + $0x48] sm:$0xff]  ;;  %v108_v7 = vld [vmem:[#allocation5 + $0x40] sm:$0xff] }
  0x11   :  { %121 = vmatpush.msra.mxu0 %v114_v1  ;;  %1859 = vmatpush.msra.mxu2 %v114_v1  ;;  %v107_v8 = vld [vmem:[#allocation5 + $0x38] sm:$0xff]  ;;  %v106_v9 = vld [vmem:[#allocation5 + $0x30] sm:$0xff]  ;;  %v105_v10 = vld [vmem:[#allocation5 + $0x28] sm:$0xff] }
  0x12   :  { %v104_v11 = vld [vmem:[#allocation5 + $0x20] sm:$0xff]  ;;  %v103_v12 = vld [vmem:[#allocation5 + $0x18] sm:$0xff]  ;;  %v102_v13 = vld [vmem:[#allocation5 + $0x10] sm:$0xff] }
  0x13   :  { %122 = vmatpush.msra.mxu0 %v113_v2  ;;  %1860 = vmatpush.msra.mxu2 %v113_v2  ;;  %v101_v14 = vld [vmem:[#allocation5 + $0x8] sm:$0xff]  ;;  %v100_v15 = vld [vmem:[#allocation5] sm:$0xff]  ;;  %v70_v20 = vld [vmem:[#allocation2 + $0x10] sm:$0xff] }
  0x14   :  { %v68_v16 = vld [vmem:[#allocation2] sm:$0xff]  ;;  %v69_v18 = vld [vmem:[#allocation2 + $0x8] sm:$0xff]  ;;  %v86_v21 = vld [vmem:[#allocation2 + $0x90] sm:$0xff] }
  0x15   :  { %123 = vmatpush.msra.mxu0 %v112_v3  ;;  %1861 = vmatpush.msra.mxu2 %v112_v3  ;;  %v84_v17 = vld [vmem:[#allocation2 + $0x80] sm:$0xff]  ;;  %v85_v19 = vld [vmem:[#allocation2 + $0x88] sm:$0xff]  ;;  %v71_v22 = vld [vmem:[#allocation2 + $0x18] sm:$0xff] }
  0x16   :  { %v87_v23 = vld [vmem:[#allocation2 + $0x98] sm:$0xff]  ;;  %v72_v24 = vld [vmem:[#allocation2 + $0x20] sm:$0xff]  ;;  %v73_v26 = vld [vmem:[#allocation2 + $0x28] sm:$0xff] }
  0x17   :  { %124 = vmatpush.msra.mxu0 %v111_v4  ;;  %1862 = vmatpush.msra.mxu2 %v111_v4  ;;  %v88_v25 = vld [vmem:[#allocation2 + $0xa0] sm:$0xff]  ;;  %v89_v27 = vld [vmem:[#allocation2 + $0xa8] sm:$0xff]  ;;  %v74_v28 = vld [vmem:[#allocation2 + $0x30] sm:$0xff] }
  0x18   :  { %v90_v29 = vld [vmem:[#allocation2 + $0xb0] sm:$0xff]  ;;  %v75_v30 = vld [vmem:[#allocation2 + $0x38] sm:$0xff]  ;;  %v76_v32 = vld [vmem:[#allocation2 + $0x40] sm:$0xff] }
  0x19   :  { %125 = vmatpush.msra.mxu0 %v110_v5  ;;  %1863 = vmatpush.msra.mxu2 %v110_v5  ;;  %v91_v31 = vld [vmem:[#allocation2 + $0xb8] sm:$0xff]  ;;  %v92_v33 = vld [vmem:[#allocation2 + $0xc0] sm:$0xff]  ;;  %v77_v34 = vld [vmem:[#allocation2 + $0x48] sm:$0xff] }
  0x1a   :  { %v93_v35 = vld [vmem:[#allocation2 + $0xc8] sm:$0xff]  ;;  %v78_v36 = vld [vmem:[#allocation2 + $0x50] sm:$0xff]  ;;  %v79_v38 = vld [vmem:[#allocation2 + $0x58] sm:$0xff] }
  0x1b   :  { %126 = vmatpush.msra.mxu0 %v109_v6  ;;  %1864 = vmatpush.msra.mxu2 %v109_v6  ;;  %v94_v37 = vld [vmem:[#allocation2 + $0xd0] sm:$0xff]  ;;  %v95_v39 = vld [vmem:[#allocation2 + $0xd8] sm:$0xff]  ;;  %v80_v40 = vld [vmem:[#allocation2 + $0x60] sm:$0xff] }
  0x1c   :  { %v96_v41 = vld [vmem:[#allocation2 + $0xe0] sm:$0xff]  ;;  %v81_v42 = vld [vmem:[#allocation2 + $0x68] sm:$0xff]  ;;  %v82_v44 = vld [vmem:[#allocation2 + $0x70] sm:$0xff] }
  0x1d   :  { %127 = vmatpush.msra.mxu0 %v108_v7  ;;  %1865 = vmatpush.msra.mxu2 %v108_v7  ;;  %v97_v43 = vld [vmem:[#allocation2 + $0xe8] sm:$0xff]  ;;  %v98_v45 = vld [vmem:[#allocation2 + $0xf0] sm:$0xff]  ;;  %v1656_v46 = vld [vmem:[#allocation7 + $0x78] sm:$0xff] }
  0x1e   :  { %v83_v47 = vld [vmem:[#allocation2 + $0x78] sm:$0xff]  ;;  %1661 = vmatpush.msra.mxu1 %v1656_v46  ;;  %1874 = vmatpush.msra.mxu3 %v1656_v46  ;;  %v1655_v49 = vld [vmem:[#allocation7 + $0x70] sm:$0xff]  ;;  %v1654_v50 = vld [vmem:[#allocation7 + $0x68] sm:$0xff] }
  0x1f   :  { %128 = vmatpush.msra.mxu0 %v107_v8  ;;  %1866 = vmatpush.msra.mxu2 %v107_v8  ;;  %v99_v48 = vld [vmem:[#allocation2 + $0xf8] sm:$0xff]  ;;  %v2122_v51 = vld [vmem:[%s3442_s2] ss:$0 sm:$0xff]  ;;  %v1651_v56 = vld [vmem:[#allocation7 + $0x50] sm:$0xff] }
  0x20   :  { %1662 = vmatpush.msra.mxu1 %v1655_v49  ;;  %1875 = vmatpush.msra.mxu3 %v1655_v49  ;;  %v1653_v52 = vld [vmem:[#allocation7 + $0x60] sm:$0xff]  ;;  %v1652_v54 = vld [vmem:[#allocation7 + $0x58] sm:$0xff]  ;;  %v1650_v58 = vld [vmem:[#allocation7 + $0x48] sm:$0xff] }
  0x21   :  { %129 = vmatpush.msra.mxu0 %v106_v9  ;;  %1867 = vmatpush.msra.mxu2 %v106_v9  ;;  %v1649_v61 = vld [vmem:[#allocation7 + $0x40] sm:$0xff]  ;;  %v1648_v1 = vld [vmem:[#allocation7 + $0x38] sm:$0xff]  ;;  %v1647_v7 = vld [vmem:[#allocation7 + $0x30] sm:$0xff] }
  0x22   :  { %1663 = vmatpush.msra.mxu1 %v1654_v50  ;;  %1876 = vmatpush.msra.mxu3 %v1654_v50 }
  0x23   :  { %130 = vmatpush.msra.mxu0 %v105_v10  ;;  %1868 = vmatpush.msra.mxu2 %v105_v10 }
  0x24   :  { %1664 = vmatpush.msra.mxu1 %v1653_v52  ;;  %1877 = vmatpush.msra.mxu3 %v1653_v52 }
  0x25   :  { %131 = vmatpush.msra.mxu0 %v104_v11  ;;  %1869 = vmatpush.msra.mxu2 %v104_v11  ;;  %v1646_v11 = vld [vmem:[#allocation7 + $0x28] sm:$0xff] }
  0x26   :  { %1665 = vmatpush.msra.mxu1 %v1652_v54  ;;  %1878 = vmatpush.msra.mxu3 %v1652_v54 }
  0x27   :  { %132 = vmatpush.msra.mxu0 %v103_v12  ;;  %1870 = vmatpush.msra.mxu2 %v103_v12 }
  0x28   :  { %1666 = vmatpush.msra.mxu1 %v1651_v56  ;;  %1879 = vmatpush.msra.mxu3 %v1651_v56 }
  0x29   :  { %133 = vmatpush.msra.mxu0 %v102_v13  ;;  %1871 = vmatpush.msra.mxu2 %v102_v13 }
  0x2a   :  { %1667 = vmatpush.msra.mxu1 %v1650_v58  ;;  %1880 = vmatpush.msra.mxu3 %v1650_v58 }
  0x2b   :  { %134 = vmatpush.msra.mxu0 %v101_v14  ;;  %1872 = vmatpush.msra.mxu2 %v101_v14 }
  0x2c   :  { %1668 = vmatpush.msra.mxu1 %v1649_v61  ;;  %1881 = vmatpush.msra.mxu3 %v1649_v61 }
  0x2d   :  { %135 = vmatpush.msra.mxu0 %v100_v15  ;;  %1873 = vmatpush.msra.mxu2 %v100_v15 }
  0x2e   :  { %136 = vmatmul.f32.vlgmr.msra.gmra.mxu0 %v68_v16  ;;  %184 = vmatmul.f32.vlgmr.msra.gmra.mxu2 %v84_v17  ;;  %v1645_v16 = vld [vmem:[#allocation7 + $0x20] sm:$0xff] }
  0x2f   :  { %1669 = vmatpush.msra.mxu1 %v1648_v1  ;;  %1882 = vmatpush.msra.mxu3 %v1648_v1 }
  0x31   :  { %1670 = vmatpush.msra.mxu1 %v1647_v7  ;;  %1883 = vmatpush.msra.mxu3 %v1647_v7 }
  0x33   :  { %1671 = vmatpush.msra.mxu1 %v1646_v11  ;;  %1884 = vmatpush.msra.mxu3 %v1646_v11 }
  0x35   :  { %1672 = vmatpush.msra.mxu1 %v1645_v16  ;;  %1885 = vmatpush.msra.mxu3 %v1645_v16 }
  0x36   :  { %139 = vmatmul.f32.gmra.mxu0 %v69_v18  ;;  %187 = vmatmul.f32.gmra.mxu2 %v85_v19 }
  0x3e   :  { %142 = vmatmul.f32.gmra.mxu0 %v70_v20  ;;  %190 = vmatmul.f32.gmra.mxu2 %v86_v21  ;;  %v1644_v21 = vld [vmem:[#allocation7 + $0x18] sm:$0xff] }
  0x3f   :  { %1673 = vmatpush.msra.mxu1 %v1644_v21  ;;  %1886 = vmatpush.msra.mxu3 %v1644_v21 }
  0x46   :  { %145 = vmatmul.f32.gmra.mxu0 %v71_v22  ;;  %193 = vmatmul.f32.gmra.mxu2 %v87_v23 }
  0x4e   :  { %148 = vmatmul.f32.gmra.mxu0 %v72_v24  ;;  %196 = vmatmul.f32.gmra.mxu2 %v88_v25 }
  0x56   :  { %151 = vmatmul.f32.gmra.mxu0 %v73_v26  ;;  %199 = vmatmul.f32.gmra.mxu2 %v89_v27  ;;  %v1643_v26 = vld [vmem:[#allocation7 + $0x10] sm:$0xff] }
  0x57   :  { %1674 = vmatpush.msra.mxu1 %v1643_v26  ;;  %1887 = vmatpush.msra.mxu3 %v1643_v26 }
  0x5e   :  { %154 = vmatmul.f32.gmra.mxu0 %v74_v28  ;;  %202 = vmatmul.f32.gmra.mxu2 %v90_v29 }
  0x66   :  { %157 = vmatmul.f32.gmra.mxu0 %v75_v30  ;;  %205 = vmatmul.f32.gmra.mxu2 %v91_v31  ;;  %v1642_v31 = vld [vmem:[#allocation7 + $0x8] sm:$0xff] }
  0x67   :  { %1675 = vmatpush.msra.mxu1 %v1642_v31  ;;  %1888 = vmatpush.msra.mxu3 %v1642_v31 }
  0x6e   :  { %160 = vmatmul.f32.gmra.mxu0 %v76_v32  ;;  %208 = vmatmul.f32.gmra.mxu2 %v92_v33 }
  0x76   :  { %163 = vmatmul.f32.gmra.mxu0 %v77_v34  ;;  %211 = vmatmul.f32.gmra.mxu2 %v93_v35 }
  0x7e   :  { %166 = vmatmul.f32.gmra.mxu0 %v78_v36  ;;  %214 = vmatmul.f32.gmra.mxu2 %v94_v37 }
  0x86   :  { %169 = vmatmul.f32.gmra.mxu0 %v79_v38  ;;  %217 = vmatmul.f32.gmra.mxu2 %v95_v39  ;;  %v1641_v38 = vld [vmem:[#allocation7] sm:$0xff] }
  0x87   :  { %1676 = vmatpush.msra.mxu1 %v1641_v38  ;;  %1889 = vmatpush.msra.mxu3 %v1641_v38 }
  0x8e   :  { %172 = vmatmul.f32.gmra.mxu0 %v80_v40  ;;  %220 = vmatmul.f32.gmra.mxu2 %v96_v41 }
  0x96   :  { %175 = vmatmul.f32.gmra.mxu0 %v81_v42  ;;  %223 = vmatmul.f32.gmra.mxu2 %v97_v43 }
  0x9e   :  { %178 = vmatmul.f32.gmra.mxu0 %v82_v44  ;;  %226 = vmatmul.f32.gmra.mxu2 %v98_v45 }
  0xa6   :  { %181 = vmatmul.f32.gmra.mxu0 %v83_v47  ;;  %229 = vmatmul.f32.gmra.mxu2 %v99_v48 }
  0xab   :  { %v137_v53 = vpop.f32.mrf.mxu0 }
  0xac   :  { %v2125_v55 = vadd.f32 %v2122_v51, %v137_v53 }
  0xae   :  { %v2128_v57 = vmul.f32 0.70710677, %v2125_v55 }
  0xb0   :  { %v297_v59 = vmul.f32 %v2128_v57, %v2128_v57 }
  0xb1   :  { %v185_v60 = vpop.f32.mrf.mxu2 }
  0xb2   :  { %v2132_v62 = vmin.f32 %v297_v59, 16.0  ;;  %v2135_v63 = vadd.f32 %v2122_v51, %v185_v60 }
  0xb3   :  { %v140_v0 = vpop.f32.mrf.mxu0 }
  0xb4   :  { %v2138_v2 = vmul.f32 0.70710677, %v2135_v63  ;;  %v2141_v3 = vadd.f32 %v2122_v51, %v140_v0  ;;  %v310_v4 = vmul.f32 3.8918573e-05, %v2132_v62  ;;  %v299_v14 = vmul.f32 2.1237322e-06, %v2132_v62 }
  0xb6   :  { %v937_v5 = vmul.f32 %v2138_v2, %v2138_v2  ;;  %v2147_v6 = vmul.f32 0.70710677, %v2141_v3  ;;  %v311_v8 = vadd.f32 0.001143296, %v310_v4  ;;  %v300_v25 = vadd.f32 0.00028619796, %v299_v14 }
  0xb8   :  { %v2149_v9 = vmin.f32 %v937_v5, 16.0  ;;  %v337_v10 = vmul.f32 %v2147_v6, %v2147_v6  ;;  %v312_v13 = vmul.f32 %v311_v8, %v2132_v62  ;;  %v301_v36 = vmul.f32 %v300_v25, %v2132_v62 }
  0xb9   :  { %v188_v12 = vpop.f32.mrf.mxu2 }
  0xba   :  { %v2156_v15 = vadd.f32 %v2122_v51, %v188_v12  ;;  %v939_v17 = vmul.f32 2.1237322e-06, %v2149_v9  ;;  %v2159_v18 = vmin.f32 %v337_v10, 16.0  ;;  %v313_v20 = vadd.f32 0.014752088, %v312_v13 }
  0xbb   :  { %v143_v19 = vpop.f32.mrf.mxu0  ;;  %v302_v49 = vadd.f32 0.0036580483, %v301_v36 }
  0xbc   :  { %v2162_v22 = vmul.f32 0.70710677, %v2156_v15  ;;  %v2165_v23 = vadd.f32 %v2122_v51, %v143_v19  ;;  %v314_v24 = vmul.f32 %v313_v20, %v2132_v62  ;;  %v940_v27 = vadd.f32 0.00028619796, %v939_v17 }
  0xbd   :  { %v339_v28 = vmul.f32 2.1237322e-06, %v2159_v18  ;;  %v303_v4 = vmul.f32 %v302_v49, %v2132_v62  ;;  %v2250_v49 = vmul.f32 0.5, %v2135_v63 }
  0xbe   :  { %v977_v29 = vmul.f32 %v2162_v22, %v2162_v22  ;;  %v2172_v30 = vmul.f32 0.70710677, %v2165_v23  ;;  %v315_v32 = vadd.f32 0.112945676, %v314_v24  ;;  %v941_v39 = vmul.f32 %v940_v27, %v2149_v9 }
  0xbf   :  { %v340_v40 = vadd.f32 0.00028619796, %v339_v28  ;;  %v304_v19 = vadd.f32 0.05243302, %v303_v4 }
  0xc0   :  { %v2174_v33 = vmin.f32 %v977_v29, 16.0  ;;  %v377_v34 = vmul.f32 %v2172_v30, %v2172_v30  ;;  %v316_v44 = vmul.f32 %v315_v32, %v2132_v62  ;;  %v942_v50 = vadd.f32 0.0036580483, %v941_v39 }
  0xc1   :  { %v191_v35 = vpop.f32.mrf.mxu2  ;;  %v341_v52 = vmul.f32 %v340_v40, %v2159_v18  ;;  %v305_v36 = vmul.f32 %v304_v19, %v2132_v62 }
  0xc2   :  { %v2180_v37 = vadd.f32 %v2122_v51, %v191_v35  ;;  %v979_v41 = vmul.f32 2.1237322e-06, %v2174_v33  ;;  %v2184_v42 = vmin.f32 %v377_v34, 16.0  ;;  %v317_v58 = vadd.f32 0.4994258, %v316_v44 }
  0xc3   :  { %v146_v43 = vpop.f32.mrf.mxu0  ;;  %v943_v5 = vmul.f32 %v942_v50, %v2149_v9  ;;  %v342_v7 = vadd.f32 0.0036580483, %v341_v52 }
  0xc4   :  { %v980_v45 = vadd.f32 0.00028619796, %v979_v41  ;;  %v379_v46 = vmul.f32 2.1237322e-06, %v2184_v42  ;;  %v2189_v47 = vmul.f32 0.70710677, %v2180_v37  ;;  %v2192_v48 = vadd.f32 %v2122_v51, %v146_v43 }
  0xc5   :  { %v318_v11 = vmul.f32 %v317_v58, %v2132_v62  ;;  %v944_v20 = vadd.f32 0.05243302, %v943_v5  ;;  %v343_v21 = vmul.f32 %v342_v7, %v2159_v18 }
  0xc6   :  { %v1017_v53 = vmul.f32 %v2189_v47, %v2189_v47  ;;  %v981_v54 = vmul.f32 %v980_v45, %v2174_v33  ;;  %v2199_v56 = vmul.f32 0.70710677, %v2192_v48  ;;  %v380_v59 = vadd.f32 0.00028619796, %v379_v46 }
  0xc7   :  { %v2228_v27 = vadd.f32 1.0, %v318_v11  ;;  %v945_v38 = vmul.f32 %v944_v20, %v2149_v9  ;;  %v344_v39 = vadd.f32 0.05243302, %v343_v21  ;;  %v2247_v46 = vmul.f32 0.5, %v2125_v55 }
  0xc8   :  { %v2201_v61 = vmin.f32 %v1017_v53, 16.0  ;;  %v417_v0 = vmul.f32 %v2199_v56, %v2199_v56  ;;  %v982_v10 = vadd.f32 0.0036580483, %v981_v54  ;;  %v381_v12 = vmul.f32 %v380_v59, %v2184_v42 }
  0xc9   :  { %v194_v60 = vpop.f32.mrf.mxu2  ;;  %1898 = vrcp.f32 %v2228_v27  ;;  %v306_v59 = vadd.f32 0.18741608, %v305_v36  ;;  %v345_v55 = vmul.f32 %v344_v39, %v2159_v18  ;;  %v2289_v36 = vmul.f32 3.8918573e-05, %v2149_v9 }
  0xca   :  { %v2206_v1 = vadd.f32 %v2122_v51, %v194_v60  ;;  %v1019_v14 = vmul.f32 2.1237322e-06, %v2201_v61  ;;  %v2216_v16 = vmin.f32 %v417_v0, 16.0  ;;  %v983_v25 = vmul.f32 %v982_v10, %v2174_v33 }
  0xcb   :  { %v149_v8 = vpop.f32.mrf.mxu0  ;;  %v382_v28 = vadd.f32 0.0036580483, %v381_v12  ;;  %v2260_v60 = vmul.f32 0.5, %v2141_v3  ;;  %v946_v0 = vadd.f32 0.18741608, %v945_v38  ;;  %v2272_v10 = vmul.f32 0.5, %v2165_v23 }
  0xcc   :  { %v2213_v13 = vmul.f32 0.70710677, %v2206_v1  ;;  %v2219_v17 = vadd.f32 %v2122_v51, %v149_v8  ;;  %v1020_v31 = vadd.f32 0.00028619796, %v1019_v14  ;;  %v419_v32 = vmul.f32 2.1237322e-06, %v2216_v16 }
  0xcd   :  { %v984_v43 = vadd.f32 0.05243302, %v983_v25  ;;  %v383_v50 = vmul.f32 %v382_v28, %v2184_v42  ;;  %v2269_v8 = vmul.f32 0.5, %v2156_v15  ;;  %v307_v15 = vmul.f32 %v306_v59, %v2132_v62 }
  0xce   :  { %v1057_v24 = vmul.f32 %v2213_v13, %v2213_v13  ;;  %v2226_v26 = vmul.f32 0.70710677, %v2219_v17  ;;  %v1021_v52 = vmul.f32 %v1020_v31, %v2201_v61  ;;  %v420_v53 = vadd.f32 0.00028619796, %v419_v32 }
  0xcf   :  { %v985_v4 = vmul.f32 %v984_v43, %v2174_v33  ;;  %v384_v11 = vadd.f32 0.05243302, %v383_v50  ;;  %v2277_v14 = vpop.eup %1898  ;;  %v346_v25 = vadd.f32 0.18741608, %v345_v55  ;;  %v947_v31 = vmul.f32 %v946_v0, %v2149_v9 }
  0xd0   :  { %v457_v34 = vmul.f32 %v2226_v26, %v2226_v26  ;;  %v2238_v40 = vmin.f32 %v1057_v24, 16.0  ;;  %v1022_v19 = vadd.f32 0.0036580483, %v1021_v52  ;;  %v421_v20 = vmul.f32 %v420_v53, %v2216_v16 }
  0xd1   :  { %v197_v29 = vpop.f32.mrf.mxu2  ;;  %v986_v32 = vadd.f32 0.18741608, %v985_v4  ;;  %v385_v38 = vmul.f32 %v384_v11, %v2184_v42  ;;  %v2293_v39 = vmul.f32 0.5, %v2180_v37  ;;  %v347_v59 = vmul.f32 %v346_v25, %v2159_v18 }
  0xd2   :  { %v2234_v35 = vadd.f32 %v2122_v51, %v197_v29  ;;  %v2240_v44 = vmin.f32 %v457_v34, 16.0  ;;  %v1059_v63 = vmul.f32 2.1237322e-06, %v2238_v40  ;;  %v1023_v43 = vmul.f32 %v1022_v19, %v2201_v61 }
  0xd3   :  { %v152_v41 = vpop.f32.mrf.mxu0  ;;  %v422_v50 = vadd.f32 0.0036580483, %v421_v20  ;;  %v987_v0 = vmul.f32 %v986_v32, %v2174_v33  ;;  %v386_v11 = vadd.f32 0.18741608, %v385_v38  ;;  %vm326_vm0 = vweird.f32 %v2277_v14 }
  0xd4   :  { %v2243_v45 = vmul.f32 0.70710677, %v2234_v35  ;;  %v2257_v58 = vadd.f32 %v2122_v51, %v152_v41  ;;  %v459_v5 = vmul.f32 2.1237322e-06, %v2240_v44  ;;  %v1060_v23 = vadd.f32 0.00028619796, %v1059_v63 }
  0xd5   :  { %v321_v41 = vmul.f32 %v2277_v14, %v2228_v27  ;;  %v948_v63 = vadd.f32 1.1283791, %v947_v31  ;;  %vm325_vm1 = vweird.f32 %v2228_v27 }
  0xd6   :  { %v1097_v54 = vmul.f32 %v2243_v45, %v2243_v45  ;;  %v2275_v3 = vmul.f32 0.70710677, %v2257_v58  ;;  %v460_v34 = vadd.f32 0.00028619796, %v459_v5  ;;  %v1061_v55 = vmul.f32 %v1060_v23, %v2238_v40  ;;  %vm2368_vm2 = vmor %vm325_vm1, %vm326_vm0 }
  0xd7   :  { %v322_v20 = vsub.f32 1.0, %v321_v41  ;;  %v2328_v41 = vmul.f32 %v948_v63, %v2138_v2  ;;  %v2341_v63 = vmul.f32 0.5, %v2219_v17 }
  0xd8   :  { %v2266_v7 = vmin.f32 %v1097_v54, 16.0  ;;  %v497_v28 = vmul.f32 %v2275_v3, %v2275_v3  ;;  %v308_v54 = vadd.f32 1.1283791, %v307_v15  ;;  %v461_v4 = vmul.f32 %v460_v34, %v2240_v44 }
  0xd9   :  { %v200_v12 = vpop.f32.mrf.mxu2  ;;  %v423_v15 = vmul.f32 %v422_v50, %v2216_v16  ;;  %v988_v34 = vadd.f32 1.1283791, %v987_v0  ;;  %3457 = vst [vmem:[#allocation14_spill] sm:$0xff] %v2341_v63 }
  0xda   :  { %v1099_v21 = vmul.f32 2.1237322e-06, %v2266_v7  ;;  %v2282_v24 = vadd.f32 %v2122_v51, %v200_v12  ;;  %v2306_v37 = vmin.f32 %v497_v28, 16.0  ;;  %v2313_v12 = vmul.f32 0.5, %v2192_v48 }
  0xdb   :  { %v155_v29 = vpop.f32.mrf.mxu0  ;;  %v348_v28 = vadd.f32 1.1283791, %v347_v59  ;;  %v309_v32 = vmul.f32 %v308_v54, %v2128_v57  ;;  %v2325_v48 = vmul.f32 0.5, %v2206_v1  ;;  %v462_v38 = vadd.f32 0.0036580483, %v461_v4 }
  0xdc   :  { %v2296_v62 = vadd.f32 %v2122_v51, %v155_v29  ;;  %v1100_v52 = vadd.f32 0.00028619796, %v1099_v21  ;;  %v2302_v53 = vmul.f32 0.70710677, %v2282_v24  ;;  %3455 = vst [vmem:[#allocation12_spill] sm:$0xff] %v2313_v12  ;;  %v323_v59 = vmul.f32 %v2277_v14, %v322_v20 }
  0xdd   :  { %v1024_v21 = vadd.f32 0.05243302, %v1023_v43  ;;  %v1062_v29 = vadd.f32 0.0036580483, %v1061_v55  ;;  %v499_v31 = vmul.f32 2.1237322e-06, %v2306_v37  ;;  %v387_v55 = vmul.f32 %v386_v11, %v2184_v42 }
  0xde   :  { %v1137_v5 = vmul.f32 %v2302_v53, %v2302_v53  ;;  %v2316_v19 = vmul.f32 0.70710677, %v2296_v62  ;;  %v1101_v25 = vmul.f32 %v1100_v52, %v2266_v7  ;;  %3456 = vst [vmem:[#allocation13_spill] sm:$0xff] %v2325_v48  ;;  %v424_v54 = vadd.f32 0.05243302, %v423_v15 }
  0xdf   :  { %v1025_v57 = vmul.f32 %v1024_v21, %v2201_v61  ;;  %v2337_v1 = vmul.f32 %v348_v28, %v2147_v6  ;;  %v1063_v2 = vmul.f32 %v1062_v29, %v2238_v40  ;;  %v500_v4 = vadd.f32 0.00028619796, %v499_v31 }
  0xe0   :  { %v2320_v23 = vmin.f32 %v1137_v5, 16.0  ;;  %v537_v50 = vmul.f32 %v2316_v19, %v2316_v19  ;;  %v1102_v0 = vadd.f32 0.0036580483, %v1101_v25  ;;  %v2344_v5 = vmul.f32 %v988_v34, %v2162_v22 }
  0xe1   :  { %v203_v52 = vpop.f32.mrf.mxu2  ;;  %v463_v20 = vmul.f32 %v462_v38, %v2240_v44  ;;  %v2348_v11 = vmul.f32 0.5, %v2234_v35  ;;  %v324_v25 = vadd.f32 %v2277_v14, %v323_v59  ;;  %v388_v17 = vadd.f32 1.1283791, %v387_v55 }
  0xe2   :  { %v1139_v43 = vmul.f32 2.1237322e-06, %v2320_v23  ;;  %v2351_v21 = vadd.f32 %v2122_v51, %v203_v52  ;;  %v2353_v6 = vmin.f32 %v537_v50, 16.0  ;;  %v1026_v28 = vadd.f32 0.18741608, %v1025_v57 }
  0xe3   :  { %3458 = vst [vmem:[#allocation15_spill] sm:$0xff] %v2348_v11  ;;  %v425_v22 = vmul.f32 %v424_v54, %v2216_v16  ;;  %v1103_v29 = vmul.f32 %v1102_v0, %v2266_v7  ;;  %v1064_v31 = vadd.f32 0.05243302, %v1063_v2  ;;  %v501_v35 = vmul.f32 %v500_v4, %v2306_v37  ;;  %v158_v38 = vpop.f32.mrf.mxu0 }
  0xe4   :  { %v1140_v15 = vadd.f32 0.00028619796, %v1139_v43  ;;  %v329_v34 = vand.u32 2147483647, %v2228_v27  ;;  %v464_v43 = vadd.f32 0.05243302, %v463_v20  ;;  %v328_v0 = vsel %vm2368_vm2, %v2277_v14, %v324_v25 }
  0xe5   :  { %v2363_v50 = vmul.f32 0.5, %v2257_v58  ;;  %v2366_v52 = vmul.f32 0.70710677, %v2351_v21  ;;  %v331_v55 = vand.u32 2147483648, %v2228_v27  ;;  %v539_v54 = vmul.f32 2.1237322e-06, %v2353_v6 }
  0xe6   :  { %v1141_v57 = vmul.f32 %v1140_v15, %v2320_v23  ;;  %v951_v58 = vadd.f32 0.001143296, %v2289_v36  ;;  %v426_v2 = vadd.f32 0.18741608, %v425_v22  ;;  %v1104_v4 = vadd.f32 0.05243302, %v1103_v29 }
  0xe7   :  { %3459 = vst [vmem:[#allocation16_spill] sm:$0xff] %v2363_v50  ;;  %v332_v20 = vor.u32 1.1754944e-38, %v331_v55  ;;  %v2380_v50 = vadd.f32 %v2122_v51, %v158_v38  ;;  %v1027_v11 = vmul.f32 %v1026_v28, %v2201_v61  ;;  %v1065_v27 = vmul.f32 %v1064_v31, %v2238_v40 }
  0xe8   :  { %v502_v63 = vadd.f32 0.0036580483, %v501_v35  ;;  %vm330_vm3 = vcmp.eq.f32.partialorder %v329_v34, 8.507059e+37  ;;  %v465_v15 = vmul.f32 %v464_v43, %v2240_v44  ;;  %v1177_v59 = vmul.f32 %v2366_v52, %v2366_v52 }
  0xe9   :  { %v333_v14 = vsel %vm330_vm3, %v332_v20, %v328_v0  ;;  %v952_v36 = vmul.f32 %v951_v58, %v2149_v9  ;;  %v2389_v25 = vmul.f32 %v388_v17, %v2172_v30  ;;  %v1142_v22 = vadd.f32 0.0036580483, %v1141_v57 }
  0xea   :  { %v540_v29 = vadd.f32 0.00028619796, %v539_v54  ;;  %v334_v38 = vmul.f32 %v333_v14, %v309_v32  ;;  %v427_v28 = vmul.f32 %v426_v2, %v2216_v16  ;;  %v1105_v31 = vmul.f32 %v1104_v4, %v2266_v7 }
  0xeb   :  { %v2394_v35 = vmul.f32 0.70710677, %v2380_v50  ;;  %v953_v34 = vadd.f32 0.014752088, %v952_v36  ;;  %v1028_v43 = vadd.f32 1.1283791, %v1027_v11  ;;  %v503_v0 = vmul.f32 %v502_v63, %v2306_v37 }
  0xec   :  { %v1066_v55 = vadd.f32 0.18741608, %v1065_v27  ;;  %v1826_v20 = vclamps-f32 %v334_v38, 1.0  ;;  %v466_v58 = vadd.f32 0.18741608, %v465_v15  ;;  %v2397_v48 = vmin.f32 %v1177_v59, 16.0 }
  0xed   :  { %v954_v30 = vmul.f32 %v953_v34, %v2149_v9  ;;  %v350_v32 = vmul.f32 3.8918573e-05, %v2159_v18  ;;  %v2402_v17 = vmul.f32 0.5, %v2282_v24  ;;  %v1143_v57 = vmul.f32 %v1142_v22, %v2320_v23  ;;  %v206_v34 = vpop.f32.mrf.mxu2 }
  0xee   :  { %v541_v54 = vmul.f32 %v540_v29, %v2353_v6  ;;  %v1577_v2 = vadd.f32 1.0, %v1826_v20  ;;  %v428_v11 = vadd.f32 1.1283791, %v427_v28  ;;  %v1106_v4 = vadd.f32 0.18741608, %v1105_v31 }
  0xef   :  { %3462 = vst [vmem:[#allocation17_spill] sm:$0xff] %v2402_v17  ;;  %v577_v63 = vmul.f32 %v2394_v35, %v2394_v35  ;;  %v955_v27 = vadd.f32 0.112945676, %v954_v30  ;;  %v1067_v15 = vmul.f32 %v1066_v55, %v2238_v40  ;;  %v504_v59 = vadd.f32 0.05243302, %v503_v0 }
  0xf0   :  { %v1609_v14 = vmul.f32 %v1577_v2, %v2247_v46  ;;  %v351_v36 = vadd.f32 0.001143296, %v350_v32  ;;  %v467_v24 = vmul.f32 %v466_v58, %v2240_v44  ;;  %v1179_v38 = vmul.f32 2.1237322e-06, %v2397_v48 }
  0xf1   :  { %v956_v22 = vmul.f32 %v955_v27, %v2149_v9  ;;  %v990_v29 = vmul.f32 3.8918573e-05, %v2174_v33  ;;  %v1144_v28 = vadd.f32 0.05243302, %v1143_v57  ;;  %v542_v31 = vadd.f32 0.0036580483, %v541_v54 }
  0xf2   :  { %1677 = vmatmul.f32.vlgmr.msra.gmra.mxu1 %v1609_v14  ;;  %v352_v20 = vmul.f32 %v351_v36, %v2159_v18  ;;  %v390_v55 = vmul.f32 3.8918573e-05, %v2184_v42  ;;  %v1107_v0 = vmul.f32 %v1106_v4, %v2266_v7  ;;  %v2417_v46 = vmin.f32 %v577_v63, 16.0 }
  0xf3   :  { %v957_v30 = vadd.f32 0.4994258, %v956_v22  ;;  %v991_v58 = vadd.f32 0.001143296, %v990_v29  ;;  %v1068_v32 = vadd.f32 1.1283791, %v1067_v15  ;;  %v505_v2 = vmul.f32 %v504_v59, %v2306_v37 }
  0xf4   :  { %v353_v27 = vadd.f32 0.014752088, %v352_v20  ;;  %v391_v17 = vadd.f32 0.001143296, %v390_v55  ;;  %v468_v12 = vadd.f32 1.1283791, %v467_v24  ;;  %v2422_v14 = vadd.f32 %v2122_v51, %v206_v34 }
  0xf5   :  { %v1180_v57 = vadd.f32 0.00028619796, %v1179_v38  ;;  %v958_v54 = vmul.f32 %v957_v30, %v2149_v9  ;;  %v1145_v36 = vmul.f32 %v1144_v28, %v2320_v23  ;;  %v543_v4 = vmul.f32 %v542_v31, %v2353_v6 }
  0xf6   :  { %v354_v63 = vmul.f32 %v353_v27, %v2159_v18  ;;  %v992_v22 = vmul.f32 %v991_v58, %v2174_v33  ;;  %v2429_v15 = vmul.f32 %v1028_v43, %v2189_v47  ;;  %v1108_v59 = vadd.f32 1.1283791, %v1107_v0 }
  0xf7   :  { %v579_v24 = vmul.f32 2.1237322e-06, %v2417_v46  ;;  %v2432_v38 = vadd.f32 1.0, %v958_v54  ;;  %v506_v9 = vadd.f32 0.18741608, %v505_v2  ;;  %v392_v20 = vmul.f32 %v391_v17, %v2184_v42 }
  0xf8   :  { %v355_v29 = vadd.f32 0.112945676, %v354_v63  ;;  %v993_v34 = vadd.f32 0.014752088, %v992_v22  ;;  %v2436_v28 = vmul.f32 %v428_v11, %v2199_v56  ;;  %v2439_v31 = vmul.f32 0.5, %v2296_v62 }
  0xf9   :  { %1900 = vrcp.f32 %v2432_v38  ;;  %v2443_v47 = vmul.f32 0.70710677, %v2422_v14  ;;  %v1146_v43 = vadd.f32 0.18741608, %v1145_v36  ;;  %v544_v55 = vadd.f32 0.05243302, %v543_v4 }
  0xfa   :  { %3463 = vst [vmem:[#allocation18_spill] sm:$0xff] %v2439_v31  ;;  %v1181_v0 = vmul.f32 %v1180_v57, %v2397_v48  ;;  %v356_v30 = vmul.f32 %v355_v29, %v2159_v18  ;;  %v2448_v58 = vmul.f32 %v1068_v32, %v2213_v13  ;;  %v2451_v56 = vmul.f32 0.5, %v2351_v21  ;;  %v161_v57 = vpop.f32.mrf.mxu0 }
  0xfb   :  { %v580_v17 = vadd.f32 0.00028619796, %v579_v24  ;;  %v994_v62 = vmul.f32 %v993_v34, %v2174_v33  ;;  %v2455_v11 = vmul.f32 %v468_v12, %v2226_v26  ;;  %v2458_v2 = vmul.f32 %v1108_v59, %v2243_v45 }
  0xfc   :  { %3464 = vst [vmem:[#allocation19_spill] sm:$0xff] %v2451_v56  ;;  %v507_v27 = vmul.f32 %v506_v9, %v2306_v37  ;;  %v393_v54 = vadd.f32 0.014752088, %v392_v20  ;;  %v1217_v13 = vmul.f32 %v2443_v47, %v2443_v47  ;;  %v357_v32 = vadd.f32 0.4994258, %v356_v30 }
  0xfd   :  { %v2464_v21 = vadd.f32 %v2122_v51, %v161_v57  ;;  %v995_v36 = vadd.f32 0.112945676, %v994_v62  ;;  %v1147_v4 = vmul.f32 %v1146_v43, %v2320_v23  ;;  %v545_v26 = vmul.f32 %v544_v55, %v2353_v6 }
  0xfe   :  { %v1182_v12 = vadd.f32 0.0036580483, %v1181_v0  ;;  %v2469_v45 = vmul.f32 0.5, %v2380_v50  ;;  %v581_v22 = vmul.f32 %v580_v17, %v2417_v46  ;;  %v358_v59 = vmul.f32 %v357_v32, %v2159_v18 }
  0xff   :  { %v1901_v63 = vpop.eup %1900  ;;  %v2474_v24 = vmul.f32 0.70710677, %v2464_v21  ;;  %v996_v9 = vmul.f32 %v995_v36, %v2174_v33  ;;  %v508_v29 = vadd.f32 1.1283791, %v507_v27  ;;  %v394_v20 = vmul.f32 %v393_v54, %v2184_v42 }
 0x100   :  { %3465 = vst [vmem:[#allocation20_spill] sm:$0xff] %v2469_v45  ;;  %v961_v34 = vmul.f32 %v1901_v63, %v2432_v38  ;;  %v1030_v43 = vmul.f32 3.8918573e-05, %v2201_v61  ;;  %v2480_v55 = vmin.f32 %v1217_v13, 16.0  ;;  %v2482_v50 = vadd.f32 1.0, %v358_v59  ;;  %v209_v59 = vpop.f32.mrf.mxu2 }
 0x101   :  { %v617_v0 = vmul.f32 %v2474_v24, %v2474_v24  ;;  %v997_v18 = vadd.f32 0.4994258, %v996_v9  ;;  %v1148_v30 = vadd.f32 1.1283791, %v1147_v4  ;;  %v546_v17 = vadd.f32 0.18741608, %v545_v26 }
 0x102   :  { %v1183_v62 = vmul.f32 %v1182_v12, %v2397_v48  ;;  %v962_v57 = vsub.f32 1.0, %v961_v34  ;;  %v582_v27 = vadd.f32 0.0036580483, %v581_v22  ;;  %v969_v32 = vand.u32 2147483647, %v2432_v38 }
 0x103   :  { %v971_v54 = vand.u32 2147483648, %v2432_v38  ;;  %1902 = vrcp.f32 %v2482_v50  ;;  %vm966_vm4 = vweird.f32 %v1901_v63  ;;  %v998_v36 = vmul.f32 %v997_v18, %v2174_v33 }
 0x104   :  { %v963_v13 = vmul.f32 %v1901_v63, %v962_v57  ;;  %v395_v45 = vadd.f32 0.112945676, %v394_v20  ;;  %v2492_v9 = vmul.f32 %v508_v29, %v2275_v3  ;;  %v1219_v4 = vmul.f32 2.1237322e-06, %v2480_v55 }
 0x105   :  { %v2495_v26 = vmin.f32 %v617_v0, 16.0  ;;  %v1031_v12 = vadd.f32 0.001143296, %v1030_v43  ;;  %v547_v22 = vmul.f32 %v546_v17, %v2353_v6  ;;  %vm965_vm5 = vweird.f32 %v2432_v38 }
 0x106   :  { %v964_v34 = vadd.f32 %v1901_v63, %v963_v13  ;;  %v2499_v56 = vadd.f32 1.0, %v998_v36  ;;  %v1184_v57 = vadd.f32 0.05243302, %v1183_v62  ;;  %v583_v33 = vmul.f32 %v582_v27, %v2417_v46  ;;  %vm967_vm6 = vmor %vm965_vm5, %vm966_vm4 }
 0x107   :  { %v972_v20 = vor.u32 1.1754944e-38, %v971_v54  ;;  %v2503_v3 = vadd.f32 %v2122_v51, %v209_v59  ;;  %vm970_vm7 = vcmp.eq.f32.partialorder %v969_v32, 8.507059e+37  ;;  %v396_v43 = vmul.f32 %v395_v45, %v2184_v42 }
 0x108   :  { %v968_v29 = vsel %vm967_vm6, %v1901_v63, %v964_v34  ;;  %1904 = vrcp.f32 %v2499_v56  ;;  %v1220_v17 = vadd.f32 0.00028619796, %v1219_v4  ;;  %v619_v38 = vmul.f32 2.1237322e-06, %v2495_v26 }
 0x109   :  { %v1903_v0 = vpop.eup %1902  ;;  %v973_v18 = vsel %vm970_vm7, %v972_v20, %v968_v29  ;;  %v1032_v62 = vmul.f32 %v1031_v12, %v2201_v61  ;;  %v2510_v27 = vmul.f32 %v1148_v30, %v2302_v53  ;;  %v548_v54 = vadd.f32 1.1283791, %v547_v22 }
 0x10a   :  { %v974_v13 = vmul.f32 %v973_v18, %v2328_v41  ;;  %v361_v63 = vmul.f32 %v1903_v0, %v2482_v50  ;;  %v1185_v32 = vmul.f32 %v1184_v57, %v2397_v48  ;;  %v584_v36 = vadd.f32 0.05243302, %v583_v33 }
 0x10b   :  { %3466 = vst [vmem:[#allocation21_spill] sm:$0xff] %v2510_v27  ;;  %v369_v45 = vand.u32 2147483647, %v2482_v50  ;;  %v2517_v59 = vmul.f32 0.70710677, %v2503_v3  ;;  %v371_v12 = vand.u32 2147483648, %v2482_v50  ;;  %v1221_v53 = vmul.f32 %v1220_v17, %v2480_v55 }
 0x10c   :  { %v1842_v4 = vclamps-f32 %v974_v13, 1.0  ;;  %v362_v34 = vsub.f32 1.0, %v361_v63  ;;  %v397_v20 = vadd.f32 0.4994258, %v396_v43  ;;  %v620_v30 = vadd.f32 0.00028619796, %v619_v38 }
 0x10d   :  { %v1033_v22 = vadd.f32 0.014752088, %v1032_v62  ;;  %v430_v41 = vmul.f32 3.8918573e-05, %v2216_v16  ;;  %vm366_vm8 = vweird.f32 %v1903_v0  ;;  %vm365_vm9 = vweird.f32 %v2482_v50 }
 0x10e   :  { %v1905_v29 = vpop.eup %1904  ;;  %v1593_v18 = vadd.f32 1.0, %v1842_v4  ;;  %v363_v57 = vmul.f32 %v1903_v0, %v362_v34  ;;  %v398_v33 = vmul.f32 %v397_v20, %v2184_v42  ;;  %vm2524_vm10 = vcmp.eq.f32.partialorder %v369_v45, 8.507059e+37  ;;  %vm367_vm11 = vmor %vm365_vm9, %vm366_vm8 }
 0x10f   :  { %v1001_v43 = vmul.f32 %v1905_v29, %v2499_v56  ;;  %v1257_v17 = vmul.f32 %v2517_v59, %v2517_v59  ;;  %v372_v63 = vor.u32 1.1754944e-38, %v371_v12  ;;  %v1009_v42 = vand.u32 2147483647, %v2499_v56 }
 0x110   :  { %v1625_v38 = vmul.f32 %v1593_v18, %v2250_v49  ;;  %v364_v62 = vadd.f32 %v1903_v0, %v363_v57  ;;  %v2532_v4 = vadd.f32 1.0, %v398_v33  ;;  %v1034_v50 = vmul.f32 %v1033_v22, %v2201_v61  ;;  %v164_v57 = vpop.f32.mrf.mxu0 }
 0x111   :  { %v1002_v34 = vsub.f32 1.0, %v1001_v43  ;;  %v431_v45 = vadd.f32 0.001143296, %v430_v41  ;;  %v621_v31 = vmul.f32 %v620_v30, %v2495_v26  ;;  %v1011_v27 = vand.u32 2147483648, %v2499_v56 }
 0x112   :  { %1725 = vmatmul.f32.vlgmr.msra.gmra.mxu3 %v1625_v38  ;;  %v368_v20 = vsel %vm367_vm11, %v1903_v0, %v364_v62  ;;  %1906 = vrcp.f32 %v2532_v4  ;;  %vm1006_vm12 = vweird.f32 %v1905_v29  ;;  %v2541_v18 = vmin.f32 %v1257_v17, 16.0 }
 0x113   :  { %v373_v49 = vsel %vm2524_vm10, %v372_v63, %v368_v20  ;;  %v1003_v12 = vmul.f32 %v1905_v29, %v1002_v34  ;;  %v1186_v33 = vadd.f32 0.18741608, %v1185_v32  ;;  %v585_v22 = vmul.f32 %v584_v36, %v2417_v46 }
 0x114   :  { %v1222_v41 = vadd.f32 0.0036580483, %v1221_v53  ;;  %v374_v0 = vmul.f32 %v373_v49, %v2337_v1  ;;  %vm1005_vm13 = vweird.f32 %v2499_v56  ;;  %vm1010_vm14 = vcmp.eq.f32.partialorder %v1009_v42, 8.507059e+37 }
 0x115   :  { %v1004_v43 = vadd.f32 %v1905_v29, %v1003_v12  ;;  %v1035_v30 = vadd.f32 0.112945676, %v1034_v50  ;;  %vm1007_vm15 = vmor %vm1005_vm13, %vm1006_vm12  ;;  %v1012_v13 = vor.u32 1.1754944e-38, %v1011_v27  ;;  %v2547_v62 = vadd.f32 %v2122_v51, %v164_v57 }
 0x116   :  { %v1827_v38 = vclamps-f32 %v374_v0, 1.0  ;;  %v432_v17 = vmul.f32 %v431_v45, %v2216_v16  ;;  %v622_v63 = vadd.f32 0.0036580483, %v621_v31  ;;  %v1259_v36 = vmul.f32 2.1237322e-06, %v2541_v18  ;;  %v212_v31 = vpop.f32.mrf.mxu2 }
 0x117   :  { %v1008_v32 = vsel %vm1007_vm15, %v1905_v29, %v1004_v43  ;;  %v1036_v53 = vmul.f32 %v1035_v30, %v2201_v61  ;;  %v2553_v34 = vmul.f32 %v548_v54, %v2316_v19  ;;  %v1187_v27 = vmul.f32 %v1186_v33, %v2397_v48 }
 0x118   :  { %v1907_v1 = vpop.eup %1906  ;;  %v1578_v56 = vadd.f32 1.0, %v1827_v38  ;;  %v1013_v42 = vsel %vm1010_vm14, %v1012_v13, %v1008_v32  ;;  %v433_v50 = vadd.f32 0.014752088, %v432_v17  ;;  %v586_v20 = vadd.f32 0.18741608, %v585_v22 }
 0x119   :  { %v1014_v49 = vmul.f32 %v1013_v42, %v2344_v5  ;;  %v401_v45 = vmul.f32 %v1907_v1, %v2532_v4  ;;  %v1223_v29 = vmul.f32 %v1222_v41, %v2480_v55  ;;  %v2561_v57 = vmul.f32 0.70710677, %v2547_v62 }
 0x11a   :  { %v1610_v12 = vmul.f32 %v1578_v56, %v2260_v60  ;;  %v1037_v19 = vadd.f32 0.4994258, %v1036_v53  ;;  %v623_v54 = vmul.f32 %v622_v63, %v2495_v26  ;;  %v1260_v43 = vadd.f32 0.00028619796, %v1259_v36 }
 0x11b   :  { %v1843_v0 = vclamps-f32 %v1014_v49, 1.0  ;;  %v402_v30 = vsub.f32 1.0, %v401_v45  ;;  %v411_v33 = vand.u32 2147483648, %v2532_v4  ;;  %v2567_v22 = vadd.f32 %v2122_v51, %v212_v31 }
 0x11c   :  { %1680 = vmatmul.f32.gmra.mxu1 %v1610_v12  ;;  %v1038_v5 = vmul.f32 %v1037_v19, %v2201_v61  ;;  %v434_v41 = vmul.f32 %v433_v50, %v2216_v16  ;;  %vm406_vm0 = vweird.f32 %v1907_v1  ;;  %v409_v13 = vand.u32 2147483647, %v2532_v4 }
 0x11d   :  { %v1594_v60 = vadd.f32 1.0, %v1843_v0  ;;  %v403_v38 = vmul.f32 %v1907_v1, %v402_v30  ;;  %vm405_vm1 = vweird.f32 %v2532_v4  ;;  %v657_v17 = vmul.f32 %v2561_v57, %v2561_v57 }
 0x11e   :  { %v2574_v63 = vadd.f32 1.0, %v1038_v5  ;;  %v2577_v32 = vmul.f32 0.70710677, %v2567_v22  ;;  %v435_v53 = vadd.f32 0.112945676, %v434_v41  ;;  %v2582_v50 = vmul.f32 0.5, %v2422_v14  ;;  %vm407_vm2 = vmor %vm405_vm1, %vm406_vm0 }
 0x11f   :  { %v1626_v61 = vmul.f32 %v1594_v60, %v2269_v8  ;;  %v404_v36 = vadd.f32 %v1907_v1, %v403_v38  ;;  %v1070_v56 = vmul.f32 3.8918573e-05, %v2238_v40  ;;  %v1188_v42 = vadd.f32 1.1283791, %v1187_v27 }
 0x120   :  { %v412_v4 = vor.u32 1.1754944e-38, %v411_v33  ;;  %1908 = vrcp.f32 %v2574_v63  ;;  %v587_v49 = vmul.f32 %v586_v20, %v2417_v46  ;;  %vm410_vm3 = vcmp.eq.f32.partialorder %v409_v13, 8.507059e+37  ;;  %v167_v33 = vpop.f32.mrf.mxu0 }
 0x121   :  { %1728 = vmatmul.f32.gmra.mxu3 %v1626_v61  ;;  %v408_v45 = vsel %vm407_vm2, %v1907_v1, %v404_v36  ;;  %v1297_v8 = vmul.f32 %v2577_v32, %v2577_v32  ;;  %v1224_v31 = vadd.f32 0.05243302, %v1223_v29  ;;  %v624_v12 = vadd.f32 0.05243302, %v623_v54 }
 0x122   :  { %v413_v19 = vsel %vm410_vm3, %v412_v4, %v408_v45  ;;  %v436_v27 = vmul.f32 %v435_v53, %v2216_v16  ;;  %v1261_v14 = vmul.f32 %v1260_v43, %v2541_v18  ;;  %v2591_v30 = vmin.f32 %v657_v17, 16.0 }
 0x123   :  { %v414_v0 = vmul.f32 %v413_v19, %v2389_v25  ;;  %v1071_v5 = vadd.f32 0.001143296, %v1070_v56  ;;  %v2594_v20 = vmul.f32 %v1188_v42, %v2366_v52  ;;  %v2597_v1 = vmul.f32 0.5, %v2464_v21 }
 0x124   :  { %v437_v41 = vadd.f32 0.4994258, %v436_v27  ;;  %v2600_v29 = vadd.f32 %v2122_v51, %v167_v33  ;;  %v2602_v60 = vmin.f32 %v1297_v8, 16.0  ;;  %v470_v25 = vmul.f32 3.8918573e-05, %v2240_v44 }
 0x125   :  { %3469 = vst [vmem:[#allocation22_spill] sm:$0xff] %v2597_v1  ;;  %v1828_v54 = vclamps-f32 %v414_v0, 1.0  ;;  %v1072_v43 = vmul.f32 %v1071_v5, %v2238_v40  ;;  %v2606_v13 = vadd.f32 1.1283791, %v587_v49  ;;  %v1225_v52 = vmul.f32 %v1224_v31, %v2480_v55 }
 0x126   :  { %v1909_v38 = vpop.eup %1908  ;;  %v625_v17 = vmul.f32 %v624_v12, %v2495_v26  ;;  %v438_v21 = vmul.f32 %v437_v41, %v2216_v16  ;;  %v1262_v61 = vadd.f32 0.0036580483, %v1261_v14  ;;  %v659_v51 = vmul.f32 2.1237322e-06, %v2591_v30 }
 0x127   :  { %v1579_v36 = vadd.f32 1.0, %v1828_v54  ;;  %v1041_v53 = vmul.f32 %v1909_v38, %v2574_v63  ;;  %v1051_v56 = vand.u32 2147483648, %v2574_v63  ;;  %v2617_v4 = vmul.f32 0.70710677, %v2600_v29 }
 0x128   :  { %v2614_v42 = vadd.f32 1.0, %v438_v21  ;;  %v1073_v49 = vadd.f32 0.014752088, %v1072_v43  ;;  %v1299_v31 = vmul.f32 2.1237322e-06, %v2602_v60  ;;  %v1263_v14 = vmul.f32 %v1262_v61, %v2541_v18 }
 0x129   :  { %v1611_v45 = vmul.f32 %v1579_v36, %v2272_v10  ;;  %v1042_v8 = vsub.f32 1.0, %v1041_v53  ;;  %v471_v16 = vadd.f32 0.001143296, %v470_v25  ;;  %v1226_v12 = vadd.f32 0.18741608, %v1225_v52 }
 0x12a   :  { %v626_v19 = vadd.f32 0.18741608, %v625_v17  ;;  %1910 = vrcp.f32 %v2614_v42  ;;  %v1110_v27 = vmul.f32 3.8918573e-05, %v2266_v7  ;;  %vm1046_vm4 = vweird.f32 %v1909_v38 }
 0x12b   :  { %1683 = vmatmul.f32.gmra.mxu1 %v1611_v45  ;;  %v1043_v0 = vmul.f32 %v1909_v38, %v1042_v8  ;;  %v1049_v33 = vand.u32 2147483647, %v2574_v63  ;;  %v660_v5 = vadd.f32 0.00028619796, %v659_v51  ;;  %v697_v10 = vmul.f32 %v2617_v4, %v2617_v4 }
 0x12c   :  { %v1074_v41 = vmul.f32 %v1073_v49, %v2238_v40  ;;  %v472_v54 = vmul.f32 %v471_v16, %v2240_v44  ;;  %vm1045_vm5 = vweird.f32 %v2574_v63  ;;  %v1052_v25 = vor.u32 1.1754944e-38, %v1051_v56 }
 0x12d   :  { %v1044_v43 = vadd.f32 %v1909_v38, %v1043_v0  ;;  %v1300_v52 = vadd.f32 0.00028619796, %v1299_v31  ;;  %v1227_v17 = vmul.f32 %v1226_v12, %v2480_v55  ;;  %vm1047_vm6 = vmor %vm1045_vm5, %vm1046_vm4  ;;  %v1111_v36 = vadd.f32 0.001143296, %v1110_v27  ;;  %v215_v27 = vpop.f32.mrf.mxu2  ;;  %v2644_v0 = vld [vmem:[%s3442_s2] ss:$0 sm:$0xff] }
 0x12e   :  { %v1075_v21 = vadd.f32 0.112945676, %v1074_v41  ;;  %v473_v61 = vadd.f32 0.014752088, %v472_v54  ;;  %v627_v51 = vmul.f32 %v626_v19, %v2495_v26  ;;  %v1264_v53 = vadd.f32 0.05243302, %v1263_v14 }
 0x12f   :  { %v1048_v45 = vsel %vm1047_vm6, %v1909_v38, %v1044_v43  ;;  %vm1050_vm7 = vcmp.eq.f32.partialorder %v1049_v33, 8.507059e+37  ;;  %v2632_v1 = vmin.f32 %v697_v10, 16.0  ;;  %v661_v56 = vmul.f32 %v660_v5, %v2591_v30 }
 0x130   :  { %v1911_v8 = vpop.eup %1910  ;;  %v1053_v49 = vsel %vm1050_vm7, %v1052_v25, %v1048_v45  ;;  %v1076_v16 = vmul.f32 %v1075_v21, %v2238_v40  ;;  %v474_v63 = vmul.f32 %v473_v61, %v2240_v44  ;;  %v1112_v19 = vmul.f32 %v1111_v36, %v2266_v7 }
 0x131   :  { %v1054_v31 = vmul.f32 %v1053_v49, %v2429_v15  ;;  %v441_v12 = vmul.f32 %v1911_v8, %v2614_v42  ;;  %v1301_v38 = vmul.f32 %v1300_v52, %v2602_v60  ;;  %v2647_v33 = vadd.f32 %v2644_v0, %v215_v27 }
 0x132   :  { %v1077_v14 = vadd.f32 0.4994258, %v1076_v16  ;;  %v475_v10 = vadd.f32 0.112945676, %v474_v63  ;;  %v449_v15 = vand.u32 2147483647, %v2614_v42  ;;  %vm446_vm8 = vweird.f32 %v1911_v8 }
 0x133   :  { %v1844_v5 = vclamps-f32 %v1054_v31, 1.0  ;;  %v442_v41 = vsub.f32 1.0, %v441_v12  ;;  %v451_v54 = vand.u32 2147483648, %v2614_v42  ;;  %v699_v43 = vmul.f32 2.1237322e-06, %v2632_v1 }
 0x134   :  { %v1078_v25 = vmul.f32 %v1077_v14, %v2238_v40  ;;  %v2654_v52 = vmul.f32 0.70710677, %v2647_v33  ;;  %v476_v36 = vmul.f32 %v475_v10, %v2240_v44  ;;  %v1113_v45 = vadd.f32 0.014752088, %v1112_v19 }
 0x135   :  { %v1595_v21 = vadd.f32 1.0, %v1844_v5  ;;  %v443_v61 = vmul.f32 %v1911_v8, %v442_v41  ;;  %v1265_v49 = vmul.f32 %v1264_v53, %v2541_v18  ;;  %v662_v16 = vadd.f32 0.0036580483, %v661_v56  ;;  %v170_v53 = vpop.f32.mrf.mxu0 }
 0x136   :  { %v2658_v63 = vadd.f32 1.0, %v1078_v25  ;;  %v1337_v31 = vmul.f32 %v2654_v52, %v2654_v52  ;;  %vm445_vm9 = vweird.f32 %v2614_v42  ;;  %v477_v40 = vadd.f32 0.4994258, %v476_v36 }
 0x137   :  { %v1627_v12 = vmul.f32 %v1595_v21, %v2293_v39  ;;  %v444_v27 = vadd.f32 %v1911_v8, %v443_v61  ;;  %v1302_v14 = vadd.f32 0.0036580483, %v1301_v38  ;;  %vm447_vm10 = vmor %vm445_vm9, %vm446_vm8  ;;  %vm450_vm11 = vcmp.eq.f32.partialorder %v449_v15, 8.507059e+37 }
 0x138   :  { %v452_v10 = vor.u32 1.1754944e-38, %v451_v54  ;;  %1912 = vrcp.f32 %v2658_v63  ;;  %v700_v19 = vadd.f32 0.00028619796, %v699_v43  ;;  %v2666_v5 = vmin.f32 %v1337_v31, 16.0 }
 0x139   :  { %1731 = vmatmul.f32.gmra.mxu3 %v1627_v12  ;;  %v448_v56 = vsel %vm447_vm10, %v1911_v8, %v444_v27  ;;  %v1114_v41 = vmul.f32 %v1113_v45, %v2266_v7  ;;  %v2671_v39 = vmul.f32 %v2606_v13, %v2394_v35  ;;  %v1228_v42 = vadd.f32 1.1283791, %v1227_v17 }
 0x13a   :  { %v453_v38 = vsel %vm450_vm11, %v452_v10, %v448_v56  ;;  %v478_v25 = vmul.f32 %v477_v40, %v2240_v44  ;;  %v628_v15 = vadd.f32 1.1283791, %v627_v51  ;;  %v1266_v54 = vadd.f32 0.18741608, %v1265_v49 }
 0x13b   :  { %v454_v21 = vmul.f32 %v453_v38, %v2436_v28  ;;  %v2676_v61 = vadd.f32 %v2644_v0, %v170_v53  ;;  %v663_v8 = vmul.f32 %v662_v16, %v2591_v30  ;;  %v1303_v43 = vmul.f32 %v1302_v14, %v2602_v60  ;;  %v3470_v53 = vld [vmem:[#allocation12_spill] sm:$0xff] }
 0x13c   :  { %v1339_v36 = vmul.f32 2.1237322e-06, %v2666_v5  ;;  %v2681_v45 = vadd.f32 1.0, %v478_v25  ;;  %v2684_v35 = vmul.f32 0.5, %v2503_v3  ;;  %v701_v44 = vmul.f32 %v700_v19, %v2632_v1 }
 0x13d   :  { %v1829_v13 = vclamps-f32 %v454_v21, 1.0  ;;  %v1115_v17 = vadd.f32 0.112945676, %v1114_v41  ;;  %v2688_v28 = vmul.f32 %v1228_v42, %v2443_v47  ;;  %v2692_v49 = vmul.f32 0.70710677, %v2676_v61 }
 0x13e   :  { %v1913_v51 = vpop.eup %1912  ;;  %1914 = vrcp.f32 %v2681_v45  ;;  %v510_v16 = vmul.f32 3.8918573e-05, %v2306_v37  ;;  %v1267_v31 = vmul.f32 %v1266_v54, %v2541_v18  ;;  %v2697_v3 = vmul.f32 0.5, %v2547_v62 }
 0x13f   :  { %v1580_v12 = vadd.f32 1.0, %v1829_v13  ;;  %v1081_v27 = vmul.f32 %v1913_v51, %v2658_v63  ;;  %v2701_v40 = vmul.f32 %v628_v15, %v2474_v24  ;;  %v664_v47 = vadd.f32 0.05243302, %v663_v8 }
 0x140   :  { %v1304_v14 = vadd.f32 0.05243302, %v1303_v43  ;;  %v1340_v10 = vadd.f32 0.00028619796, %v1339_v36  ;;  %v702_v19 = vadd.f32 0.0036580483, %v701_v44  ;;  %v1116_v42 = vmul.f32 %v1115_v17, %v2266_v7 }
 0x141   :  { %v1612_v56 = vmul.f32 %v1580_v12, %v3470_v53  ;;  %v1082_v41 = vsub.f32 1.0, %v1081_v27  ;;  %v1089_v38 = vand.u32 2147483647, %v2658_v63  ;;  %v1091_v62 = vand.u32 2147483648, %v2658_v63 }
 0x142   :  { %v737_v25 = vmul.f32 %v2692_v49, %v2692_v49  ;;  %v511_v54 = vadd.f32 0.001143296, %v510_v16  ;;  %v1268_v21 = vadd.f32 1.1283791, %v1267_v31  ;;  %vm1086_vm12 = vweird.f32 %v1913_v51 }
 0x143   :  { %1686 = vmatmul.f32.gmra.mxu1 %v1612_v56  ;;  %v1083_v24 = vmul.f32 %v1913_v51, %v1082_v41  ;;  %v1117_v15 = vadd.f32 0.4994258, %v1116_v42  ;;  %v665_v43 = vmul.f32 %v664_v47, %v2591_v30  ;;  %v1305_v36 = vmul.f32 %v1304_v14, %v2602_v60 }
 0x144   :  { %v1915_v8 = vpop.eup %1914  ;;  %v1341_v13 = vmul.f32 %v1340_v10, %v2666_v5  ;;  %v512_v44 = vmul.f32 %v511_v54, %v2306_v37  ;;  %v703_v17 = vmul.f32 %v702_v19, %v2632_v1  ;;  %vm1085_vm13 = vweird.f32 %v2658_v63 }
 0x145   :  { %v1084_v12 = vadd.f32 %v1913_v51, %v1083_v24  ;;  %v481_v16 = vmul.f32 %v1915_v8, %v2681_v45  ;;  %vm1087_vm14 = vmor %vm1085_vm13, %vm1086_vm12  ;;  %vm1090_vm15 = vcmp.eq.f32.partialorder %v1089_v38, 8.507059e+37  ;;  %v1092_v31 = vor.u32 1.1754944e-38, %v1091_v62 }
 0x146   :  { %v2716_v27 = vmin.f32 %v737_v25, 16.0  ;;  %v1118_v47 = vmul.f32 %v1117_v15, %v2266_v7  ;;  %v489_v10 = vand.u32 2147483647, %v2681_v45  ;;  %v513_v56 = vadd.f32 0.014752088, %v512_v44 }
 0x147   :  { %v1088_v53 = vsel %vm1087_vm14, %v1913_v51, %v1084_v12  ;;  %v482_v14 = vsub.f32 1.0, %v481_v16  ;;  %v1342_v42 = vadd.f32 0.0036580483, %v1341_v13  ;;  %v491_v19 = vand.u32 2147483648, %v2681_v45  ;;  %v218_v13 = vpop.f32.mrf.mxu2 }
 0x148   :  { %v1093_v41 = vsel %vm1090_vm15, %v1092_v31, %v1088_v53  ;;  %v2721_v54 = vadd.f32 1.0, %v1118_v47  ;;  %vm486_vm0 = vweird.f32 %v1915_v8  ;;  %v514_v38 = vmul.f32 %v513_v56, %v2306_v37 }
 0x149   :  { %v1094_v63 = vmul.f32 %v1093_v41, %v2448_v58  ;;  %v483_v24 = vmul.f32 %v1915_v8, %v482_v14  ;;  %v666_v62 = vadd.f32 0.18741608, %v665_v43  ;;  %v1306_v25 = vadd.f32 0.18741608, %v1305_v36 }
 0x14a   :  { %v739_v7 = vmul.f32 2.1237322e-06, %v2716_v27  ;;  %1916 = vrcp.f32 %v2721_v54  ;;  %vm485_vm1 = vweird.f32 %v2681_v45  ;;  %v1150_v44 = vmul.f32 3.8918573e-05, %v2320_v23 }
 0x14b   :  { %v1845_v51 = vclamps-f32 %v1094_v63, 1.0  ;;  %v484_v15 = vadd.f32 %v1915_v8, %v483_v24  ;;  %v2730_v12 = vmul.f32 0.5, %v2567_v22  ;;  %v704_v58 = vadd.f32 0.05243302, %v703_v17  ;;  %vm487_vm2 = vmor %vm485_vm1, %vm486_vm0  ;;  %v3472_v22 = vld [vmem:[#allocation13_spill] sm:$0xff] }
 0x14c   :  { %v492_v16 = vor.u32 1.1754944e-38, %v491_v19  ;;  %v515_v31 = vadd.f32 0.112945676, %v514_v38  ;;  %v1343_v36 = vmul.f32 %v1342_v42, %v2666_v5  ;;  %vm490_vm3 = vcmp.eq.f32.partialorder %v489_v10, 8.507059e+37 }
 0x14d   :  { %3471 = vst [vmem:[#allocation12_spill] sm:$0xff] %v2730_v12  ;;  %v1596_v43 = vadd.f32 1.0, %v1845_v51  ;;  %v488_v47 = vsel %vm487_vm2, %v1915_v8, %v484_v15  ;;  %v740_v14 = vadd.f32 0.00028619796, %v739_v7  ;;  %v2734_v56 = vadd.f32 %v2644_v0, %v218_v13 }
 0x14e   :  { %v493_v53 = vsel %vm490_vm3, %v492_v16, %v488_v47  ;;  %v516_v45 = vmul.f32 %v515_v31, %v2306_v37  ;;  %v2738_v41 = vmul.f32 %v1268_v21, %v2517_v59  ;;  %v1151_v63 = vadd.f32 0.001143296, %v1150_v44  ;;  %v173_v21 = vpop.f32.mrf.mxu0 }
 0x14f   :  { %v1628_v17 = vmul.f32 %v1596_v43, %v3472_v22  ;;  %v494_v19 = vmul.f32 %v493_v53, %v2455_v11  ;;  %v667_v42 = vmul.f32 %v666_v62, %v2591_v30  ;;  %v1307_v8 = vmul.f32 %v1306_v25, %v2602_v60 }
 0x150   :  { %v1917_v24 = vpop.eup %1916  ;;  %v517_v10 = vadd.f32 0.4994258, %v516_v45  ;;  %v550_v38 = vmul.f32 3.8918573e-05, %v2353_v6  ;;  %v705_v7 = vmul.f32 %v704_v58, %v2632_v1  ;;  %v1152_v15 = vmul.f32 %v1151_v63, %v2320_v23  ;;  %v3473_v45 = vld [vmem:[#allocation14_spill] sm:$0xff] }
 0x151   :  { %1734 = vmatmul.f32.gmra.mxu3 %v1628_v17  ;;  %v1830_v51 = vclamps-f32 %v494_v19, 1.0  ;;  %v1121_v59 = vmul.f32 %v1917_v24, %v2721_v54  ;;  %v1344_v13 = vadd.f32 0.05243302, %v1343_v36  ;;  %v741_v11 = vmul.f32 %v740_v14, %v2716_v27 }
 0x152   :  { %v2750_v44 = vmul.f32 0.70710677, %v2734_v56  ;;  %v518_v62 = vmul.f32 %v517_v10, %v2306_v37  ;;  %v1129_v31 = vand.u32 2147483647, %v2721_v54  ;;  %v1153_v58 = vadd.f32 0.014752088, %v1152_v15 }
 0x153   :  { %v1581_v25 = vadd.f32 1.0, %v1830_v51  ;;  %v1122_v16 = vsub.f32 1.0, %v1121_v59  ;;  %v1131_v43 = vand.u32 2147483648, %v2721_v54  ;;  %v2758_v53 = vadd.f32 %v2644_v0, %v173_v21 }
 0x154   :  { %v2755_v47 = vadd.f32 1.0, %v518_v62  ;;  %v551_v36 = vadd.f32 0.001143296, %v550_v38  ;;  %vm1126_vm4 = vweird.f32 %v1917_v24  ;;  %v1154_v17 = vmul.f32 %v1153_v58, %v2320_v23 }
 0x155   :  { %v1613_v14 = vmul.f32 %v1581_v25, %v3473_v45  ;;  %v1123_v22 = vmul.f32 %v1917_v24, %v1122_v16  ;;  %v668_v37 = vadd.f32 1.1283791, %v667_v42  ;;  %v2763_v19 = vmul.f32 0.5, %v2600_v29 }
 0x156   :  { %v1377_v63 = vmul.f32 %v2750_v44, %v2750_v44  ;;  %1918 = vrcp.f32 %v2755_v47  ;;  %v1308_v10 = vadd.f32 1.1283791, %v1307_v8  ;;  %v706_v51 = vadd.f32 0.18741608, %v705_v7 }
 0x157   :  { %3474 = vst [vmem:[#allocation13_spill] sm:$0xff] %v2763_v19  ;;  %1689 = vmatmul.f32.gmra.mxu1 %v1613_v14  ;;  %v1124_v59 = vadd.f32 %v1917_v24, %v1123_v22  ;;  %vm1125_vm5 = vweird.f32 %v2721_v54  ;;  %v1132_v38 = vor.u32 1.1754944e-38, %v1131_v43  ;;  %v2770_v21 = vmul.f32 0.70710677, %v2758_v53 }
 0x158   :  { %vm1127_vm6 = vmor %vm1125_vm5, %vm1126_vm4  ;;  %v1155_v42 = vadd.f32 0.112945676, %v1154_v17  ;;  %v552_v29 = vmul.f32 %v551_v36, %v2353_v6  ;;  %v1345_v15 = vmul.f32 %v1344_v13, %v2666_v5  ;;  %v742_v62 = vadd.f32 0.0036580483, %v741_v11  ;;  %v221_v11 = vpop.f32.mrf.mxu2 }
 0x159   :  { %v1128_v25 = vsel %vm1127_vm6, %v1917_v24, %v1124_v59  ;;  %vm1130_vm7 = vcmp.eq.f32.partialorder %v1129_v31, 8.507059e+37  ;;  %v2774_v8 = vmin.f32 %v1377_v63, 16.0  ;;  %v2778_v54 = vmul.f32 %v668_v37, %v2561_v57 }
 0x15a   :  { %v1133_v16 = vsel %vm1130_vm7, %v1132_v38, %v1128_v25  ;;  %v1156_v7 = vmul.f32 %v1155_v42, %v2320_v23  ;;  %v553_v58 = vadd.f32 0.014752088, %v552_v29  ;;  %v2781_v43 = vmul.f32 %v1308_v10, %v2577_v32 }
 0x15b   :  { %v2784_v45 = vmul.f32 0.5, %v2647_v33  ;;  %v1134_v13 = vmul.f32 %v1133_v16, %v2458_v2  ;;  %v777_v31 = vmul.f32 %v2770_v21, %v2770_v21  ;;  %v1190_v22 = vmul.f32 3.8918573e-05, %v2397_v48 }
 0x15c   :  { %v1919_v24 = vpop.eup %1918  ;;  %v1157_v36 = vadd.f32 0.4994258, %v1156_v7  ;;  %v554_v14 = vmul.f32 %v553_v58, %v2353_v6  ;;  %v707_v57 = vmul.f32 %v706_v51, %v2632_v1  ;;  %v1346_v17 = vadd.f32 0.18741608, %v1345_v15 }
 0x15d   :  { %3475 = vst [vmem:[#allocation14_spill] sm:$0xff] %v2784_v45  ;;  %v1846_v32 = vclamps-f32 %v1134_v13, 1.0  ;;  %v521_v37 = vmul.f32 %v1919_v24, %v2755_v47  ;;  %v743_v33 = vmul.f32 %v742_v62, %v2716_v27  ;;  %v1379_v2 = vmul.f32 2.1237322e-06, %v2774_v8  ;;  %v3476_v62 = vld [vmem:[#allocation15_spill] sm:$0xff] }
 0x15e   :  { %v1158_v63 = vmul.f32 %v1157_v36, %v2320_v23  ;;  %v2797_v10 = vadd.f32 %v2644_v0, %v221_v11  ;;  %v531_v42 = vand.u32 2147483648, %v2755_v47  ;;  %v555_v29 = vadd.f32 0.112945676, %v554_v14 }
 0x15f   :  { %v1597_v59 = vadd.f32 1.0, %v1846_v32  ;;  %v522_v38 = vsub.f32 1.0, %v521_v37  ;;  %v529_v51 = vand.u32 2147483647, %v2755_v47  ;;  %v2801_v15 = vmin.f32 %v777_v31, 16.0 }
 0x160   :  { %v2803_v25 = vadd.f32 1.0, %v1158_v63  ;;  %v1191_v16 = vadd.f32 0.001143296, %v1190_v22  ;;  %vm526_vm8 = vweird.f32 %v1919_v24  ;;  %v556_v23 = vmul.f32 %v555_v29, %v2353_v6  ;;  %v176_v22 = vpop.f32.mrf.mxu0 }
 0x161   :  { %v1629_v7 = vmul.f32 %v1597_v59, %v3476_v62  ;;  %v523_v58 = vmul.f32 %v1919_v24, %v522_v38  ;;  %v708_v13 = vadd.f32 1.1283791, %v707_v57  ;;  %v744_v11 = vadd.f32 0.05243302, %v743_v33 }
 0x162   :  { %1920 = vrcp.f32 %v2803_v25  ;;  %v2809_v36 = vmul.f32 0.70710677, %v2797_v10  ;;  %v1380_v14 = vadd.f32 0.00028619796, %v1379_v2  ;;  %vm525_vm9 = vweird.f32 %v2755_v47 }
 0x163   :  { %1737 = vmatmul.f32.gmra.mxu3 %v1629_v7  ;;  %v524_v31 = vadd.f32 %v1919_v24, %v523_v58  ;;  %v532_v32 = vor.u32 1.1754944e-38, %v531_v42  ;;  %vm527_vm10 = vmor %vm525_vm9, %vm526_vm8  ;;  %v779_v37 = vmul.f32 2.1237322e-06, %v2801_v15  ;;  %v557_v63 = vadd.f32 0.4994258, %v556_v23 }
 0x164   :  { %v2814_v59 = vadd.f32 %v2644_v0, %v176_v22  ;;  %v1192_v57 = vmul.f32 %v1191_v16, %v2397_v48  ;;  %v1347_v33 = vmul.f32 %v1346_v17, %v2666_v5  ;;  %vm530_vm11 = vcmp.eq.f32.partialorder %v529_v51, 8.507059e+37 }
 0x165   :  { %v528_v38 = vsel %vm527_vm10, %v1919_v24, %v524_v31  ;;  %v590_v2 = vmul.f32 3.8918573e-05, %v2417_v46  ;;  %v1417_v47 = vmul.f32 %v2809_v36, %v2809_v36  ;;  %v558_v42 = vmul.f32 %v557_v63, %v2353_v6 }
 0x166   :  { %v533_v29 = vsel %vm530_vm11, %v532_v32, %v528_v38  ;;  %v2823_v62 = vmul.f32 0.70710677, %v2814_v59  ;;  %v2826_v7 = vmul.f32 %v708_v13, %v2617_v4  ;;  %v2829_v16 = vmul.f32 0.5, %v2676_v61 }
 0x167   :  { %v1381_v24 = vmul.f32 %v1380_v14, %v2774_v8  ;;  %v534_v17 = vmul.f32 %v533_v29, %v2492_v9  ;;  %v745_v58 = vmul.f32 %v744_v11, %v2716_v27  ;;  %v780_v23 = vadd.f32 0.00028619796, %v779_v37 }
 0x168   :  { %3477 = vst [vmem:[#allocation15_spill] sm:$0xff] %v2829_v16  ;;  %v1921_v51 = vpop.eup %1920  ;;  %v2834_v31 = vadd.f32 1.0, %v558_v42  ;;  %v1193_v6 = vadd.f32 0.014752088, %v1192_v57  ;;  %v2836_v32 = vadd.f32 1.1283791, %v1347_v33  ;;  %v817_v9 = vmul.f32 %v2823_v62, %v2823_v62 }
 0x169   :  { %v2839_v22 = vmul.f32 0.5, %v2734_v56  ;;  %v1831_v4 = vclamps-f32 %v534_v17, 1.0  ;;  %v1161_v61 = vmul.f32 %v1921_v51, %v2803_v25  ;;  %v2842_v13 = vmin.f32 %v1417_v47, 16.0  ;;  %v3479_v47 = vld [vmem:[#allocation16_spill] sm:$0xff] }
 0x16a   :  { %1922 = vrcp.f32 %v2834_v31  ;;  %v591_v11 = vadd.f32 0.001143296, %v590_v2  ;;  %v1382_v14 = vadd.f32 0.0036580483, %v1381_v24  ;;  %v1230_v57 = vmul.f32 3.8918573e-05, %v2480_v55 }
 0x16b   :  { %3478 = vst [vmem:[#allocation23_spill] sm:$0xff] %v2839_v22  ;;  %v1582_v37 = vadd.f32 1.0, %v1831_v4  ;;  %v1162_v63 = vsub.f32 1.0, %v1161_v61  ;;  %v746_v33 = vadd.f32 0.18741608, %v745_v58  ;;  %v781_v56 = vmul.f32 %v780_v23, %v2801_v15 }
 0x16c   :  { %v1171_v38 = vand.u32 2147483648, %v2803_v25  ;;  %v1194_v29 = vmul.f32 %v1193_v6, %v2397_v48  ;;  %vm1166_vm12 = vweird.f32 %v1921_v51  ;;  %v1169_v22 = vand.u32 2147483647, %v2803_v25 }
 0x16d   :  { %v1614_v42 = vmul.f32 %v1582_v37, %v3479_v47  ;;  %v1163_v17 = vmul.f32 %v1921_v51, %v1162_v63  ;;  %v1419_v2 = vmul.f32 2.1237322e-06, %v2842_v13  ;;  %v2854_v24 = vmin.f32 %v817_v9, 16.0 }
 0x16e   :  { %v1195_v4 = vadd.f32 0.112945676, %v1194_v29  ;;  %v592_v61 = vmul.f32 %v591_v11, %v2417_v46  ;;  %v1383_v58 = vmul.f32 %v1382_v14, %v2774_v8  ;;  %vm1165_vm13 = vweird.f32 %v2803_v25  ;;  %v224_v29 = vpop.f32.mrf.mxu2 }
 0x16f   :  { %1692 = vmatmul.f32.gmra.mxu1 %v1614_v42  ;;  %v1164_v23 = vadd.f32 %v1921_v51, %v1163_v17  ;;  %v1231_v6 = vadd.f32 0.001143296, %v1230_v57  ;;  %v782_v37 = vadd.f32 0.0036580483, %v781_v56  ;;  %vm1167_vm14 = vmor %vm1165_vm13, %vm1166_vm12  ;;  %v1172_v63 = vor.u32 1.1754944e-38, %v1171_v38  ;;  %v3480_v57 = vld [vmem:[#allocation21_spill] sm:$0xff] }
 0x170   :  { %v1923_v16 = vpop.eup %1922  ;;  %v1196_v47 = vmul.f32 %v1195_v4, %v2397_v48  ;;  %v593_v45 = vadd.f32 0.014752088, %v592_v61  ;;  %vm1170_vm15 = vcmp.eq.f32.partialorder %v1169_v22, 8.507059e+37  ;;  %v1420_v42 = vadd.f32 0.00028619796, %v1419_v2 }
 0x171   :  { %v1168_v19 = vsel %vm1167_vm14, %v1921_v51, %v1164_v23  ;;  %v561_v9 = vmul.f32 %v1923_v16, %v2834_v31  ;;  %v1232_v11 = vmul.f32 %v1231_v6, %v2480_v55  ;;  %v819_v17 = vmul.f32 2.1237322e-06, %v2854_v24 }
 0x172   :  { %v1173_v14 = vsel %vm1170_vm15, %v1172_v63, %v1168_v19  ;;  %v1197_v25 = vadd.f32 0.4994258, %v1196_v47  ;;  %v2865_v38 = vadd.f32 %v2644_v0, %v224_v29  ;;  %v594_v4 = vmul.f32 %v593_v45, %v2417_v46 }
 0x173   :  { %v1174_v12 = vmul.f32 %v1173_v14, %v3480_v57  ;;  %v562_v56 = vsub.f32 1.0, %v561_v9  ;;  %v569_v51 = vand.u32 2147483647, %v2834_v31  ;;  %v571_v22 = vand.u32 2147483648, %v2834_v31  ;;  %v3482_v57 = vld [vmem:[#allocation17_spill] sm:$0xff] }
 0x174   :  { %3481 = vst [vmem:[#allocation16_spill] sm:$0xff] %v2865_v38  ;;  %v1198_v61 = vmul.f32 %v1197_v25, %v2397_v48  ;;  %v1233_v23 = vadd.f32 0.014752088, %v1232_v11  ;;  %vm566_vm0 = vweird.f32 %v1923_v16  ;;  %v2872_v6 = vmul.f32 0.70710677, %v2865_v38 }
 0x175   :  { %v1847_v19 = vclamps-f32 %v1174_v12, 1.0  ;;  %v563_v2 = vmul.f32 %v1923_v16, %v562_v56  ;;  %v1421_v63 = vmul.f32 %v1420_v42, %v2842_v13  ;;  %vm565_vm1 = vweird.f32 %v2834_v31 }
 0x176   :  { %v820_v47 = vadd.f32 0.00028619796, %v819_v17  ;;  %v2876_v9 = vadd.f32 1.0, %v1198_v61  ;;  %v1457_v14 = vmul.f32 %v2872_v6, %v2872_v6  ;;  %v595_v48 = vadd.f32 0.112945676, %v594_v4  ;;  %vm567_vm2 = vmor %vm565_vm1, %vm566_vm0 }
 0x177   :  { %v1598_v45 = vadd.f32 1.0, %v1847_v19  ;;  %v564_v29 = vadd.f32 %v1923_v16, %v563_v2  ;;  %v747_v12 = vmul.f32 %v746_v33, %v2716_v27  ;;  %v572_v11 = vor.u32 1.1754944e-38, %v571_v22 }
 0x178   :  { %1924 = vrcp.f32 %v2876_v9  ;;  %v1234_v25 = vmul.f32 %v1233_v23, %v2480_v55  ;;  %v1384_v42 = vadd.f32 0.05243302, %v1383_v58  ;;  %vm570_vm3 = vcmp.eq.f32.partialorder %v569_v51, 8.507059e+37 }
 0x179   :  { %v1630_v31 = vmul.f32 %v1598_v45, %v3482_v57  ;;  %v568_v17 = vsel %vm567_vm2, %v1923_v16, %v564_v29  ;;  %v1422_v56 = vadd.f32 0.0036580483, %v1421_v63  ;;  %v821_v19 = vmul.f32 %v820_v47, %v2854_v24  ;;  %v179_v63 = vpop.f32.mrf.mxu0 }
 0x17a   :  { %v573_v61 = vsel %vm570_vm3, %v572_v11, %v568_v17  ;;  %v2885_v2 = vmin.f32 %v1457_v14, 16.0  ;;  %v2888_v4 = vmul.f32 0.5, %v2758_v53  ;;  %v783_v33 = vmul.f32 %v782_v37, %v2801_v15 }
 0x17b   :  { %1740 = vmatmul.f32.gmra.mxu3 %v1630_v31  ;;  %v574_v22 = vmul.f32 %v573_v61, %v2553_v34  ;;  %v596_v58 = vmul.f32 %v595_v48, %v2417_v46  ;;  %v2895_v16 = vmul.f32 %v2836_v32, %v2654_v52  ;;  %v748_v51 = vadd.f32 1.1283791, %v747_v12 }
 0x17c   :  { %v1459_v23 = vmul.f32 2.1237322e-06, %v2885_v2  ;;  %v1235_v47 = vadd.f32 0.112945676, %v1234_v25  ;;  %v1385_v45 = vmul.f32 %v1384_v42, %v2774_v8  ;;  %v2900_v37 = vadd.f32 %v2644_v0, %v179_v63 }
 0x17d   :  { %v1832_v53 = vclamps-f32 %v574_v22, 1.0  ;;  %v597_v29 = vadd.f32 0.4994258, %v596_v58  ;;  %v1423_v34 = vmul.f32 %v1422_v56, %v2842_v13  ;;  %v822_v48 = vadd.f32 0.0036580483, %v821_v19  ;;  %v3485_v56 = vld [vmem:[#allocation18_spill] sm:$0xff] }
 0x17e   :  { %3483 = vst [vmem:[#allocation21_spill] sm:$0xff] %v2900_v37  ;;  %v1925_v14 = vpop.eup %1924  ;;  %v1460_v11 = vadd.f32 0.00028619796, %v1459_v23  ;;  %v1236_v52 = vmul.f32 %v1235_v47, %v2480_v55  ;;  %v784_v32 = vadd.f32 0.05243302, %v783_v33  ;;  %v227_v23 = vpop.f32.mrf.mxu2  ;;  %vm1205_vm5 = vweird.f32 %v2876_v9 }
 0x17f   :  { %v1583_v12 = vadd.f32 1.0, %v1832_v53  ;;  %v1201_v57 = vmul.f32 %v1925_v14, %v2876_v9  ;;  %v598_v25 = vmul.f32 %v597_v29, %v2417_v46  ;;  %v2908_v31 = vmul.f32 0.70710677, %v2900_v37 }
 0x180   :  { %v1461_v42 = vmul.f32 %v1460_v11, %v2885_v2  ;;  %v630_v17 = vmul.f32 3.8918573e-05, %v2495_v26  ;;  %v1270_v61 = vmul.f32 3.8918573e-05, %v2541_v18  ;;  %v1237_v33 = vadd.f32 0.4994258, %v1236_v52 }
 0x181   :  { %3484 = vst [vmem:[#allocation17_spill] sm:$0xff] %v2908_v31  ;;  %v1615_v19 = vmul.f32 %v1583_v12, %v3485_v56  ;;  %v1202_v22 = vsub.f32 1.0, %v1201_v57  ;;  %v2913_v58 = vadd.f32 1.0, %v598_v25  ;;  %v1424_v63 = vadd.f32 0.05243302, %v1423_v34 }
 0x182   :  { %v823_v47 = vmul.f32 %v822_v48, %v2854_v24  ;;  %v1211_v46 = vand.u32 2147483648, %v2876_v9  ;;  %v2918_v53 = vadd.f32 %v2644_v0, %v227_v23  ;;  %vm1206_vm4 = vweird.f32 %v1925_v14 }
 0x183   :  { %1695 = vmatmul.f32.gmra.mxu1 %v1615_v19  ;;  %v1203_v29 = vmul.f32 %v1925_v14, %v1202_v22  ;;  %v1209_v11 = vand.u32 2147483647, %v2876_v9  ;;  %1926 = vrcp.f32 %v2913_v58  ;;  %v1462_v12 = vadd.f32 0.0036580483, %v1461_v42  ;;  %vm1207_vm6 = vmor %vm1205_vm5, %vm1206_vm4 }
 0x184   :  { %3486 = vst [vmem:[#allocation18_spill] sm:$0xff] %v2918_v53  ;;  %v1238_v52 = vmul.f32 %v1237_v33, %v2480_v55  ;;  %v631_v34 = vadd.f32 0.001143296, %v630_v17  ;;  %v857_v48 = vmul.f32 %v2908_v31, %v2908_v31  ;;  %v2927_v25 = vmul.f32 0.70710677, %v2918_v53 }
 0x185   :  { %v1204_v57 = vadd.f32 %v1925_v14, %v1203_v29  ;;  %v1271_v56 = vadd.f32 0.001143296, %v1270_v61  ;;  %v785_v19 = vmul.f32 %v784_v32, %v2801_v15  ;;  %v824_v22 = vadd.f32 0.05243302, %v823_v47 }
 0x186   :  { %3487 = vst [vmem:[#allocation24_spill] sm:$0xff] %v2927_v25  ;;  %v1212_v23 = vor.u32 1.1754944e-38, %v1211_v46  ;;  %v2930_v37 = vadd.f32 1.0, %v1238_v52  ;;  %v1386_v9 = vadd.f32 0.18741608, %v1385_v45  ;;  %v1425_v42 = vmul.f32 %v1424_v63, %v2842_v13 }
 0x187   :  { %v1208_v55 = vsel %vm1207_vm6, %v1925_v14, %v1204_v57  ;;  %vm1210_vm7 = vcmp.eq.f32.partialorder %v1209_v11, 8.507059e+37  ;;  %v1463_v33 = vmul.f32 %v1462_v12, %v2885_v2  ;;  %v632_v29 = vmul.f32 %v631_v34, %v2495_v26 }
 0x188   :  { %v1213_v17 = vsel %vm1210_vm7, %v1212_v23, %v1208_v55  ;;  %1928 = vrcp.f32 %v2930_v37  ;;  %v2937_v47 = vmin.f32 %v857_v48, 16.0  ;;  %v1497_v46 = vmul.f32 %v2927_v25, %v2927_v25 }
 0x189   :  { %v1927_v61 = vpop.eup %1926  ;;  %v1214_v32 = vmul.f32 %v1213_v17, %v2594_v20  ;;  %v1272_v45 = vmul.f32 %v1271_v56, %v2541_v18  ;;  %v2943_v14 = vmul.f32 %v748_v51, %v2692_v49  ;;  %v2945_v63 = vadd.f32 0.18741608, %v785_v19 }
 0x18a   :  { %v825_v11 = vmul.f32 %v824_v22, %v2854_v24  ;;  %v601_v12 = vmul.f32 %v1927_v61, %v2913_v58  ;;  %v2950_v52 = vmul.f32 %v1386_v9, %v2774_v8  ;;  %v2952_v20 = vadd.f32 0.18741608, %v1425_v42 }
 0x18b   :  { %v1848_v34 = vclamps-f32 %v1214_v32, 1.0  ;;  %v609_v57 = vand.u32 2147483647, %v2913_v58  ;;  %v1464_v48 = vadd.f32 0.05243302, %v1463_v33  ;;  %v611_v56 = vand.u32 2147483648, %v2913_v58 }
 0x18c   :  { %v602_v23 = vsub.f32 1.0, %v601_v12  ;;  %v633_v49 = vadd.f32 0.014752088, %v632_v29  ;;  %v859_v19 = vmul.f32 2.1237322e-06, %v2937_v47  ;;  %v2957_v55 = vmin.f32 %v1497_v46, 16.0 }
 0x18d   :  { %v1599_v51 = vadd.f32 1.0, %v1848_v34  ;;  %v1273_v22 = vadd.f32 0.014752088, %v1272_v45  ;;  %v826_v53 = vadd.f32 0.18741608, %v825_v11  ;;  %vm606_vm8 = vweird.f32 %v1927_v61  ;;  %v3488_v32 = vld [vmem:[#allocation19_spill] sm:$0xff] }
 0x18e   :  { %v1929_v17 = vpop.eup %1928  ;;  %v603_v9 = vmul.f32 %v1927_v61, %v602_v23  ;;  %v634_v42 = vmul.f32 %v633_v49, %v2495_v26  ;;  %vm605_vm9 = vweird.f32 %v2913_v58  ;;  %vm2962_vm10 = vcmp.eq.f32.partialorder %v609_v57, 8.507059e+37 }
 0x18f   :  { %v1631_v25 = vmul.f32 %v1599_v51, %v3488_v32  ;;  %v1241_v29 = vmul.f32 %v1929_v17, %v2930_v37  ;;  %v1465_v46 = vmul.f32 %v1464_v48, %v2885_v2  ;;  %v612_v45 = vor.u32 1.1754944e-38, %v611_v56  ;;  %vm607_vm11 = vmor %vm605_vm9, %vm606_vm8 }
 0x190   :  { %v604_v12 = vadd.f32 %v1927_v61, %v603_v9  ;;  %v635_v34 = vadd.f32 0.112945676, %v634_v42  ;;  %v860_v11 = vadd.f32 0.00028619796, %v859_v19  ;;  %v1499_v49 = vmul.f32 2.1237322e-06, %v2957_v55 }
 0x191   :  { %1743 = vmatmul.f32.gmra.mxu3 %v1631_v25  ;;  %v1242_v23 = vsub.f32 1.0, %v1241_v29  ;;  %v1274_v51 = vmul.f32 %v1273_v22, %v2541_v18  ;;  %v1249_v57 = vand.u32 2147483647, %v2930_v37  ;;  %v1251_v32 = vand.u32 2147483648, %v2930_v37  ;;  %v182_v25 = vpop.f32.mrf.mxu0 }
 0x192   :  { %v608_v58 = vsel %vm607_vm11, %v1927_v61, %v604_v12  ;;  %v636_v31 = vmul.f32 %v635_v34, %v2495_v26  ;;  %vm1246_vm12 = vweird.f32 %v1929_v17  ;;  %vm1245_vm13 = vweird.f32 %v2930_v37 }
 0x193   :  { %v613_v48 = vsel %vm2962_vm10, %v612_v45, %v608_v58  ;;  %v1243_v56 = vmul.f32 %v1929_v17, %v1242_v23  ;;  %v1275_v9 = vadd.f32 0.112945676, %v1274_v51  ;;  %v2978_v61 = vadd.f32 %v2644_v0, %v182_v25  ;;  %vm1247_vm14 = vmor %vm1245_vm13, %vm1246_vm12 }
 0x194   :  { %v614_v19 = vmul.f32 %v613_v48, %v2671_v39  ;;  %v637_v42 = vadd.f32 0.4994258, %v636_v31  ;;  %v1466_v22 = vadd.f32 0.18741608, %v1465_v46  ;;  %v1500_v12 = vadd.f32 0.00028619796, %v1499_v49 }
 0x195   :  { %3491 = vst [vmem:[#allocation19_spill] sm:$0xff] %v2978_v61  ;;  %v1244_v29 = vadd.f32 %v1929_v17, %v1243_v56  ;;  %v1276_v34 = vmul.f32 %v1275_v9, %v2541_v18  ;;  %v1252_v33 = vor.u32 1.1754944e-38, %v1251_v32  ;;  %v670_v23 = vmul.f32 3.8918573e-05, %v2591_v30  ;;  %v3493_v56 = vld [vmem:[#allocation20_spill] sm:$0xff] }
 0x196   :  { %v1833_v38 = vclamps-f32 %v614_v19, 1.0  ;;  %v638_v45 = vmul.f32 %v637_v42, %v2495_v26  ;;  %vm1250_vm15 = vcmp.eq.f32.partialorder %v1249_v57, 8.507059e+37  ;;  %v2984_v39 = vmul.f32 0.70710677, %v2978_v61  ;;  %v230_v42 = vpop.f32.mrf.mxu2 }
 0x197   :  { %v1248_v51 = vsel %vm1247_vm14, %v1929_v17, %v1244_v29  ;;  %v1277_v37 = vadd.f32 0.4994258, %v1276_v34  ;;  %v861_v46 = vmul.f32 %v860_v11, %v2937_v47  ;;  %v1501_v32 = vmul.f32 %v1500_v12, %v2957_v55 }
 0x198   :  { %3492 = vst [vmem:[#allocation25_spill] sm:$0xff] %v2984_v39  ;;  %v1584_v31 = vadd.f32 1.0, %v1833_v38  ;;  %v1253_v58 = vsel %vm1250_vm15, %v1252_v33, %v1248_v51  ;;  %v2987_v49 = vadd.f32 1.0, %v638_v45  ;;  %v897_v26 = vmul.f32 %v2984_v39, %v2984_v39 }
 0x199   :  { %v1254_v48 = vmul.f32 %v1253_v58, %v2688_v28  ;;  %v1278_v17 = vmul.f32 %v1277_v37, %v2541_v18  ;;  %v1388_v57 = vadd.f32 1.1283791, %v2950_v52  ;;  %v671_v38 = vadd.f32 0.001143296, %v670_v23 }
 0x19a   :  { %v1616_v25 = vmul.f32 %v1584_v31, %v3493_v56  ;;  %1930 = vrcp.f32 %v2987_v49  ;;  %v787_v11 = vmul.f32 %v2945_v63, %v2801_v15  ;;  %v1427_v28 = vmul.f32 %v2952_v20, %v2842_v13 }
 0x19b   :  { %v827_v9 = vmul.f32 %v826_v53, %v2854_v24  ;;  %v1849_v19 = vclamps-f32 %v1254_v48, 1.0  ;;  %v1467_v29 = vmul.f32 %v1466_v22, %v2885_v2  ;;  %v862_v18 = vadd.f32 0.0036580483, %v861_v46 }
 0x19c   :  { %1698 = vmatmul.f32.gmra.mxu1 %v1616_v25  ;;  %v3003_v52 = vmin.f32 %v897_v26, 16.0  ;;  %v3005_v12 = vadd.f32 1.0, %v1278_v17  ;;  %v3008_v34 = vmul.f32 0.5, %v2797_v10  ;;  %v1502_v63 = vadd.f32 0.0036580483, %v1501_v32 }
 0x19d   :  { %v1600_v33 = vadd.f32 1.0, %v1849_v19  ;;  %v649_v45 = vand.u32 2147483647, %v2987_v49  ;;  %v3013_v53 = vadd.f32 %v2644_v0, %v230_v42  ;;  %v672_v20 = vmul.f32 %v671_v38, %v2591_v30 }
 0x19e   :  { %1932 = vrcp.f32 %v3005_v12  ;;  %v1310_v22 = vmul.f32 3.8918573e-05, %v2602_v60  ;;  %v3017_v23 = vadd.f32 1.1283791, %v787_v11  ;;  %v3019_v51 = vadd.f32 1.1283791, %v1427_v28 }
 0x19f   :  { %3494 = vst [vmem:[#allocation20_spill] sm:$0xff] %v3013_v53  ;;  %v1632_v10 = vmul.f32 %v1600_v33, %v2582_v50  ;;  %v651_v37 = vand.u32 2147483648, %v2987_v49  ;;  %v3024_v46 = vmul.f32 %v1388_v57, %v2750_v44  ;;  %v3026_v58 = vadd.f32 1.1283791, %v827_v9 }
 0x1a0   :  { %v1931_v31 = vpop.eup %1930  ;;  %v3028_v0 = vadd.f32 1.1283791, %v1467_v29  ;;  %v899_v48 = vmul.f32 2.1237322e-06, %v3003_v52  ;;  %v3032_v32 = vmul.f32 %v862_v18, %v2937_v47  ;;  %v3035_v26 = vmul.f32 %v1502_v63, %v2957_v55 }
 0x1a1   :  { %1746 = vmatmul.f32.gmra.mxu3 %v1632_v10  ;;  %v641_v50 = vmul.f32 %v1931_v31, %v2987_v49  ;;  %vm3038_vm0 = vcmp.eq.f32.partialorder %v649_v45, 8.507059e+37  ;;  %vm645_vm1 = vweird.f32 %v2987_v49  ;;  %v3044_v44 = vmul.f32 0.70710677, %v3013_v53 }
 0x1a2   :  { %v673_v57 = vadd.f32 0.014752088, %v672_v20  ;;  %v1311_v56 = vadd.f32 0.001143296, %v1310_v22  ;;  %v652_v38 = vor.u32 1.1754944e-38, %v651_v37  ;;  %vm1285_vm2 = vweird.f32 %v3005_v12 }
 0x1a3   :  { %3497 = vst [vmem:[#allocation26_spill] sm:$0xff] %v3044_v44  ;;  %v642_v25 = vsub.f32 1.0, %v641_v50  ;;  %v710_v11 = vmul.f32 3.8918573e-05, %v2632_v1  ;;  %v1350_v28 = vmul.f32 3.8918573e-05, %v2666_v5  ;;  %vm646_vm3 = vweird.f32 %v1931_v31 }
 0x1a4   :  { %v1933_v9 = vpop.eup %1932  ;;  %v900_v19 = vadd.f32 0.00028619796, %v899_v48  ;;  %v674_v42 = vmul.f32 %v673_v57, %v2591_v30  ;;  %v1312_v29 = vmul.f32 %v1311_v56, %v2602_v60  ;;  %v1289_v45 = vand.u32 2147483647, %v3005_v12  ;;  %vm647_vm4 = vmor %vm645_vm1, %vm646_vm3 }
 0x1a5   :  { %v643_v18 = vmul.f32 %v1931_v31, %v642_v25  ;;  %v1281_v33 = vmul.f32 %v1933_v9, %v3005_v12  ;;  %v711_v63 = vadd.f32 0.001143296, %v710_v11  ;;  %v1537_v20 = vmul.f32 %v3044_v44, %v3044_v44 }
 0x1a6   :  { %v675_v22 = vadd.f32 0.112945676, %v674_v42  ;;  %v1313_v10 = vadd.f32 0.014752088, %v1312_v29  ;;  %v1351_v53 = vadd.f32 0.001143296, %v1350_v28  ;;  %v901_v57 = vmul.f32 %v900_v19, %v3003_v52 }
 0x1a7   :  { %v644_v37 = vadd.f32 %v1931_v31, %v643_v18  ;;  %v1282_v48 = vsub.f32 1.0, %v1281_v33  ;;  %v712_v50 = vmul.f32 %v711_v63, %v2632_v1  ;;  %v1291_v56 = vand.u32 2147483648, %v3005_v12 }
 0x1a8   :  { %v676_v25 = vmul.f32 %v675_v22, %v2591_v30  ;;  %v1314_v11 = vmul.f32 %v1313_v10, %v2602_v60  ;;  %vm1286_vm5 = vweird.f32 %v1933_v9  ;;  %v3064_v18 = vmin.f32 %v1537_v20, 16.0 }
 0x1a9   :  { %v648_v61 = vsel %vm647_vm4, %v1931_v31, %v644_v37  ;;  %v1283_v44 = vmul.f32 %v1933_v9, %v1282_v48  ;;  %v713_v42 = vadd.f32 0.014752088, %v712_v50  ;;  %v1352_v49 = vmul.f32 %v1351_v53, %v2666_v5  ;;  %vm1287_vm6 = vmor %vm1285_vm2, %vm1286_vm5 }
 0x1aa   :  { %v653_v29 = vsel %vm3038_vm0, %v652_v38, %v648_v61  ;;  %v677_v28 = vadd.f32 0.4994258, %v676_v25  ;;  %v1315_v63 = vadd.f32 0.112945676, %v1314_v11  ;;  %v902_v39 = vadd.f32 0.0036580483, %v901_v57 }
 0x1ab   :  { %v654_v19 = vmul.f32 %v653_v29, %v2701_v40  ;;  %v1284_v33 = vadd.f32 %v1933_v9, %v1283_v44  ;;  %v714_v22 = vmul.f32 %v713_v42, %v2632_v1  ;;  %vm1290_vm7 = vcmp.eq.f32.partialorder %v1289_v45, 8.507059e+37  ;;  %v3498_v25 = vld [vmem:[#allocation22_spill] sm:$0xff] }
 0x1ac   :  { %v1292_v31 = vor.u32 1.1754944e-38, %v1291_v56  ;;  %v678_v17 = vmul.f32 %v677_v28, %v2591_v30  ;;  %v1316_v20 = vmul.f32 %v1315_v63, %v2602_v60  ;;  %v1539_v40 = vmul.f32 2.1237322e-06, %v3064_v18 }
 0x1ad   :  { %v1834_v61 = vclamps-f32 %v654_v19, 1.0  ;;  %v1288_v38 = vsel %vm1287_vm6, %v1933_v9, %v1284_v33  ;;  %v715_v10 = vadd.f32 0.112945676, %v714_v22  ;;  %v1353_v37 = vadd.f32 0.014752088, %v1352_v49 }
 0x1ae   :  { %v1293_v53 = vsel %vm1290_vm7, %v1292_v31, %v1288_v38  ;;  %v3074_v44 = vadd.f32 1.0, %v678_v17  ;;  %v1317_v12 = vadd.f32 0.4994258, %v1316_v20  ;;  %v3080_v30 = vmul.f32 %v3017_v23, %v2770_v21 }
 0x1af   :  { %v1585_v48 = vadd.f32 1.0, %v1834_v61  ;;  %v1294_v50 = vmul.f32 %v1293_v53, %v2738_v41  ;;  %v716_v45 = vmul.f32 %v715_v10, %v2632_v1  ;;  %v3083_v9 = vmul.f32 0.5, %v2814_v59 }
 0x1b0   :  { %v864_v57 = vadd.f32 0.05243302, %v3032_v32  ;;  %1934 = vrcp.f32 %v3074_v44  ;;  %v3089_v56 = vmul.f32 %v3019_v51, %v2809_v36  ;;  %v1504_v41 = vadd.f32 0.05243302, %v3035_v26 }
 0x1b1   :  { %v1617_v11 = vmul.f32 %v1585_v48, %v3498_v25  ;;  %v1850_v42 = vclamps-f32 %v1294_v50, 1.0  ;;  %v903_v29 = vmul.f32 %v902_v39, %v3003_v52  ;;  %v1540_v21 = vadd.f32 0.00028619796, %v1539_v40 }
 0x1b2   :  { %v1318_v23 = vmul.f32 %v1317_v12, %v2602_v60  ;;  %v717_v59 = vadd.f32 0.4994258, %v716_v45  ;;  %v3097_v32 = vmul.f32 %v3026_v58, %v2823_v62  ;;  %v3101_v28 = vmul.f32 %v3028_v0, %v2872_v6 }
 0x1b3   :  { %1701 = vmatmul.f32.gmra.mxu1 %v1617_v11  ;;  %v1601_v36 = vadd.f32 1.0, %v1850_v42  ;;  %v1354_v51 = vmul.f32 %v1353_v37, %v2666_v5  ;;  %v3105_v26 = vmul.f32 %v864_v57, %v2937_v47  ;;  %v750_v49 = vmul.f32 3.8918573e-05, %v2716_v27 }
 0x1b4   :  { %v3107_v39 = vadd.f32 1.0, %v1318_v23  ;;  %v718_v60 = vmul.f32 %v717_v59, %v2632_v1  ;;  %v3112_v62 = vmul.f32 %v1504_v41, %v2957_v55  ;;  %v689_v6 = vand.u32 2147483647, %v3074_v44 }
 0x1b5   :  { %v1633_v58 = vmul.f32 %v1601_v36, %v2684_v35  ;;  %v1355_v0 = vadd.f32 0.112945676, %v1354_v51  ;;  %v3116_v33 = vadd.f32 0.05243302, %v903_v29  ;;  %v3119_v63 = vmul.f32 %v1540_v21, %v3064_v18 }
 0x1b6   :  { %v1935_v19 = vpop.eup %1934  ;;  %v691_v22 = vand.u32 2147483648, %v3074_v44  ;;  %1936 = vrcp.f32 %v3107_v39  ;;  %v3124_v31 = vadd.f32 1.0, %v718_v60  ;;  %v1390_v35 = vmul.f32 3.8918573e-05, %v2774_v8 }
 0x1b7   :  { %1749 = vmatmul.f32.gmra.mxu3 %v1633_v58  ;;  %v681_v1 = vmul.f32 %v1935_v19, %v3074_v44  ;;  %v790_v17 = vmul.f32 3.8918573e-05, %v2801_v15  ;;  %vm685_vm8 = vweird.f32 %v3074_v44  ;;  %v1331_v61 = vand.u32 2147483648, %v3107_v39 }
 0x1b8   :  { %v1356_v38 = vmul.f32 %v1355_v0, %v2666_v5  ;;  %v751_v20 = vadd.f32 0.001143296, %v750_v49  ;;  %vm3131_vm9 = vcmp.eq.f32.partialorder %v689_v6, 8.507059e+37  ;;  %v1329_v40 = vand.u32 2147483647, %v3107_v39 }
 0x1b9   :  { %v682_v10 = vsub.f32 1.0, %v681_v1  ;;  %1938 = vrcp.f32 %v3124_v31  ;;  %vm686_vm10 = vweird.f32 %v1935_v19  ;;  %v692_v37 = vor.u32 1.1754944e-38, %v691_v22 }
 0x1ba   :  { %v731_v48 = vand.u32 2147483648, %v3124_v31  ;;  %v1357_v50 = vadd.f32 0.4994258, %v1356_v38  ;;  %v752_v45 = vmul.f32 %v751_v20, %v2716_v27  ;;  %v1391_v57 = vadd.f32 0.001143296, %v1390_v35  ;;  %vm687_vm13 = vmor %vm685_vm8, %vm686_vm10 }
 0x1bb   :  { %v683_v12 = vmul.f32 %v1935_v19, %v682_v10  ;;  %v791_v41 = vadd.f32 0.001143296, %v790_v17  ;;  %vm1325_vm11 = vweird.f32 %v3107_v39  ;;  %v1332_v11 = vor.u32 1.1754944e-38, %v1331_v61 }
 0x1bc   :  { %v1937_v25 = vpop.eup %1936  ;;  %v729_v42 = vand.u32 2147483647, %v3124_v31  ;;  %v1358_v29 = vmul.f32 %v1357_v50, %v2666_v5  ;;  %vm3143_vm12 = vcmp.eq.f32.partialorder %v1329_v40, 8.507059e+37  ;;  %v753_v36 = vadd.f32 0.014752088, %v752_v45 }
 0x1bd   :  { %v684_v21 = vadd.f32 %v1935_v19, %v683_v12  ;;  %v1321_v23 = vmul.f32 %v1937_v25, %v3107_v39  ;;  %v1430_v51 = vmul.f32 3.8918573e-05, %v2842_v13  ;;  %vm725_vm14 = vweird.f32 %v3124_v31 }
 0x1be   :  { %v732_v60 = vor.u32 1.1754944e-38, %v731_v48  ;;  %v3152_v49 = vadd.f32 1.0, %v1358_v29  ;;  %v1392_v5 = vmul.f32 %v1391_v57, %v2774_v8  ;;  %v754_v22 = vmul.f32 %v753_v36, %v2716_v27 }
 0x1bf   :  { %v1939_v58 = vpop.eup %1938  ;;  %v688_v6 = vsel %vm687_vm13, %v1935_v19, %v684_v21  ;;  %v1322_v0 = vsub.f32 1.0, %v1321_v23  ;;  %v792_v1 = vmul.f32 %v791_v41, %v2801_v15  ;;  %vm1326_vm15 = vweird.f32 %v1937_v25 }
 0x1c0   :  { %v693_v35 = vsel %vm3131_vm9, %v692_v37, %v688_v6  ;;  %v721_v44 = vmul.f32 %v1939_v58, %v3124_v31  ;;  %vm3160_vm0 = vcmp.eq.f32.partialorder %v729_v42, 8.507059e+37  ;;  %1940 = vrcp.f32 %v3152_v49  ;;  %vm1327_vm2 = vmor %vm1325_vm11, %vm1326_vm15 }
 0x1c1   :  { %v694_v61 = vmul.f32 %v693_v35, %v2778_v54  ;;  %v1323_v19 = vmul.f32 %v1937_v25, %v1322_v0  ;;  %v1431_v38 = vadd.f32 0.001143296, %v1430_v51  ;;  %v830_v20 = vmul.f32 3.8918573e-05, %v2854_v24 }
 0x1c2   :  { %v722_v10 = vsub.f32 1.0, %v721_v44  ;;  %vm726_vm1 = vweird.f32 %v1939_v58  ;;  %v755_v40 = vadd.f32 0.112945676, %v754_v22  ;;  %v1393_v53 = vadd.f32 0.014752088, %v1392_v5 }
 0x1c3   :  { %v1835_v37 = vclamps-f32 %v694_v61, 1.0  ;;  %v1324_v48 = vadd.f32 %v1937_v25, %v1323_v19  ;;  %v1369_v50 = vand.u32 2147483647, %v3152_v49  ;;  %v793_v12 = vadd.f32 0.014752088, %v792_v1  ;;  %vm727_vm3 = vmor %vm725_vm14, %vm726_vm1 }
 0x1c4   :  { %v723_v45 = vmul.f32 %v1939_v58, %v722_v10  ;;  %v1371_v54 = vand.u32 2147483648, %v3152_v49  ;;  %v756_v57 = vmul.f32 %v755_v40, %v2716_v27  ;;  %v1394_v41 = vmul.f32 %v1393_v53, %v2774_v8 }
 0x1c5   :  { %v1586_v42 = vadd.f32 1.0, %v1835_v37  ;;  %v1328_v29 = vsel %vm1327_vm2, %v1937_v25, %v1324_v48  ;;  %v794_v21 = vmul.f32 %v793_v12, %v2801_v15  ;;  %v1432_v23 = vmul.f32 %v1431_v38, %v2842_v13 }
 0x1c6   :  { %v1941_v36 = vpop.eup %1940  ;;  %v1333_v51 = vsel %vm3143_vm12, %v1332_v11, %v1328_v29  ;;  %v724_v5 = vadd.f32 %v1939_v58, %v723_v45  ;;  %v757_v39 = vadd.f32 0.4994258, %v756_v57  ;;  %v1395_v6 = vadd.f32 0.112945676, %v1394_v41 }
 0x1c7   :  { %v1618_v0 = vmul.f32 %v1586_v42, %v2697_v3  ;;  %v1334_v22 = vmul.f32 %v1333_v51, %v2781_v43  ;;  %v1361_v25 = vmul.f32 %v1941_v36, %v3152_v49  ;;  %vm1366_vm4 = vweird.f32 %v1941_v36 }
 0x1c8   :  { %v728_v1 = vsel %vm727_vm3, %v1939_v58, %v724_v5  ;;  %v758_v35 = vmul.f32 %v757_v39, %v2716_v27  ;;  %v1396_v59 = vmul.f32 %v1395_v6, %v2774_v8  ;;  %v795_v11 = vadd.f32 0.112945676, %v794_v21 }
 0x1c9   :  { %1704 = vmatmul.f32.gmra.mxu1 %v1618_v0  ;;  %v1851_v44 = vclamps-f32 %v1334_v22, 1.0  ;;  %v733_v3 = vsel %vm3160_vm0, %v732_v60, %v728_v1  ;;  %v1362_v61 = vsub.f32 1.0, %v1361_v25  ;;  %v1433_v43 = vadd.f32 0.014752088, %v1432_v23  ;;  %v3508_v23 = vld [vmem:[#allocation13_spill] sm:$0xff] }
 0x1ca   :  { %v734_v19 = vmul.f32 %v733_v3, %v2826_v7  ;;  %v3189_v31 = vadd.f32 1.0, %v758_v35  ;;  %v1397_v38 = vadd.f32 0.4994258, %v1396_v59  ;;  %v796_v10 = vmul.f32 %v795_v11, %v2801_v15  ;;  %v3507_v7 = vld [vmem:[#allocation12_spill] sm:$0xff] }
 0x1cb   :  { %v1602_v58 = vadd.f32 1.0, %v1851_v44  ;;  %v1363_v40 = vmul.f32 %v1941_v36, %v1362_v61  ;;  %v1434_v27 = vmul.f32 %v1433_v43, %v2842_v13  ;;  %v831_v53 = vadd.f32 0.001143296, %v830_v20 }
 0x1cc   :  { %v1836_v37 = vclamps-f32 %v734_v19, 1.0  ;;  %vm1365_vm5 = vweird.f32 %v3152_v49  ;;  %vm3194_vm6 = vcmp.eq.f32.partialorder %v1369_v50, 8.507059e+37  ;;  %1942 = vrcp.f32 %v3189_v31 }
 0x1cd   :  { %v1634_v60 = vmul.f32 %v1602_v58, %v3507_v7  ;;  %v1364_v48 = vadd.f32 %v1941_v36, %v1363_v40  ;;  %v769_v12 = vand.u32 2147483647, %v3189_v31  ;;  %v1398_v45 = vmul.f32 %v1397_v38, %v2774_v8  ;;  %vm1367_vm7 = vmor %vm1365_vm5, %vm1366_vm4 }
 0x1ce   :  { %v1587_v57 = vadd.f32 1.0, %v1836_v37  ;;  %v1372_v20 = vor.u32 1.1754944e-38, %v1371_v54  ;;  %v797_v41 = vadd.f32 0.4994258, %v796_v10  ;;  %v1435_v42 = vadd.f32 0.112945676, %v1434_v27 }
 0x1cf   :  { %1752 = vmatmul.f32.gmra.mxu3 %v1634_v60  ;;  %v1368_v49 = vsel %vm1367_vm7, %v1941_v36, %v1364_v48  ;;  %v771_v50 = vand.u32 2147483648, %v3189_v31  ;;  %v3204_v29 = vadd.f32 1.0, %v1398_v45  ;;  %v832_v21 = vmul.f32 %v831_v53, %v2854_v24  ;;  %v3511_v10 = vld [vmem:[#allocation14_spill] sm:$0xff] }
 0x1d0   :  { %v1619_v51 = vmul.f32 %v1587_v57, %v3508_v23  ;;  %v1373_v5 = vsel %vm3194_vm6, %v1372_v20, %v1368_v49  ;;  %v798_v8 = vmul.f32 %v797_v41, %v2801_v15  ;;  %v1436_v39 = vmul.f32 %v1435_v42, %v2842_v13 }
 0x1d1   :  { %v3213_v54 = vadd.f32 0.18741608, %v3105_v26  ;;  %v3216_v36 = vadd.f32 0.18741608, %v3112_v62  ;;  %v1374_v6 = vmul.f32 %v1373_v5, %v2895_v16  ;;  %1944 = vrcp.f32 %v3204_v29 }
 0x1d2   :  { %v1943_v0 = vpop.eup %1942  ;;  %v3222_v22 = vmul.f32 %v3116_v33, %v3003_v52  ;;  %1707 = vmatmul.f32.gmra.mxu1 %v1619_v51  ;;  %v3224_v25 = vadd.f32 1.0, %v798_v8  ;;  %v1437_v15 = vadd.f32 0.4994258, %v1436_v39  ;;  %v833_v1 = vadd.f32 0.014752088, %v832_v21 }
 0x1d3   :  { %v3227_v26 = vadd.f32 0.0036580483, %v3119_v63  ;;  %v1852_v35 = vclamps-f32 %v1374_v6, 1.0  ;;  %v761_v62 = vmul.f32 %v1943_v0, %v3189_v31  ;;  %vm765_vm8 = vweird.f32 %v3189_v31 }
 0x1d4   :  { %vm3231_vm9 = vcmp.eq.f32.partialorder %v769_v12, 8.507059e+37  ;;  %v772_v59 = vor.u32 1.1754944e-38, %v771_v50  ;;  %v1409_v33 = vand.u32 2147483647, %v3204_v29  ;;  %1946 = vrcp.f32 %v3224_v25 }
 0x1d5   :  { %v1603_v11 = vadd.f32 1.0, %v1852_v35  ;;  %v762_v44 = vsub.f32 1.0, %v761_v62  ;;  %v1411_v3 = vand.u32 2147483648, %v3204_v29  ;;  %v1438_v63 = vmul.f32 %v1437_v15, %v2842_v13 }
 0x1d6   :  { %vm766_vm10 = vweird.f32 %v1943_v0  ;;  %vm1405_vm11 = vweird.f32 %v3204_v29  ;;  %v809_v61 = vand.u32 2147483647, %v3224_v25  ;;  %v834_v43 = vmul.f32 %v833_v1, %v2854_v24 }
 0x1d7   :  { %v1470_v19 = vmul.f32 3.8918573e-05, %v2885_v2  ;;  %v1945_v38 = vpop.eup %1944  ;;  %v1635_v58 = vmul.f32 %v1603_v11, %v3511_v10  ;;  %v763_v40 = vmul.f32 %v1943_v0, %v762_v44  ;;  %v811_v27 = vand.u32 2147483648, %v3224_v25  ;;  %vm767_vm13 = vmor %vm765_vm8, %vm766_vm10  ;;  %v3516_v10 = vld [vmem:[#allocation15_spill] sm:$0xff] }
 0x1d8   :  { %v3245_v53 = vadd.f32 1.0, %v1438_v63  ;;  %v1401_v37 = vmul.f32 %v1945_v38, %v3204_v29  ;;  %vm3248_vm12 = vcmp.eq.f32.partialorder %v1409_v33, 8.507059e+37  ;;  %v835_v17 = vadd.f32 0.112945676, %v834_v43 }
 0x1d9   :  { %v1471_v7 = vadd.f32 0.001143296, %v1470_v19  ;;  %1755 = vmatmul.f32.gmra.mxu3 %v1635_v58  ;;  %v764_v60 = vadd.f32 %v1943_v0, %v763_v40  ;;  %v1412_v48 = vor.u32 1.1754944e-38, %v1411_v3  ;;  %v870_v12 = vmul.f32 3.8918573e-05, %v2937_v47 }
 0x1da   :  { %1948 = vrcp.f32 %v3245_v53  ;;  %v1947_v45 = vpop.eup %1946  ;;  %v1402_v57 = vsub.f32 1.0, %v1401_v37  ;;  %vm805_vm14 = vweird.f32 %v3224_v25  ;;  %v836_v20 = vmul.f32 %v835_v17, %v2854_v24 }
 0x1db   :  { %v1472_v41 = vmul.f32 %v1471_v7, %v2885_v2  ;;  %v768_v42 = vsel %vm767_vm13, %v1943_v0, %v764_v60  ;;  %v801_v49 = vmul.f32 %v1947_v45, %v3224_v25  ;;  %vm3261_vm15 = vcmp.eq.f32.partialorder %v809_v61, 8.507059e+37 }
 0x1dc   :  { %v812_v21 = vor.u32 1.1754944e-38, %v811_v27  ;;  %v773_v23 = vsel %vm3231_vm9, %v772_v59, %v768_v42  ;;  %v1403_v31 = vmul.f32 %v1945_v38, %v1402_v57  ;;  %vm1406_vm0 = vweird.f32 %v1945_v38 }
 0x1dd   :  { %v837_v51 = vadd.f32 0.4994258, %v836_v20  ;;  %v774_v5 = vmul.f32 %v773_v23, %v2943_v14  ;;  %v802_v8 = vsub.f32 1.0, %v801_v49  ;;  %v1473_v39 = vadd.f32 0.014752088, %v1472_v41  ;;  %vm1407_vm2 = vmor %vm1405_vm11, %vm1406_vm0 }
 0x1de   :  { %v871_v6 = vadd.f32 0.001143296, %v870_v12  ;;  %v1404_v15 = vadd.f32 %v1945_v38, %v1403_v31  ;;  %vm1445_vm1 = vweird.f32 %v3245_v53  ;;  %v1449_v0 = vand.u32 2147483647, %v3245_v53 }
 0x1df   :  { %v1451_v1 = vand.u32 2147483648, %v3245_v53  ;;  %v838_v35 = vmul.f32 %v837_v51, %v2854_v24  ;;  %v1837_v16 = vclamps-f32 %v774_v5, 1.0  ;;  %v803_v59 = vmul.f32 %v1947_v45, %v802_v8 }
 0x1e0   :  { %v1949_v62 = vpop.eup %1948  ;;  %vm806_vm3 = vweird.f32 %v1947_v45  ;;  %v1474_v14 = vmul.f32 %v1473_v39, %v2885_v2  ;;  %v1408_v33 = vsel %vm1407_vm2, %v1945_v38, %v1404_v15  ;;  %v872_v3 = vmul.f32 %v871_v6, %v2937_v47 }
 0x1e1   :  { %v1441_v11 = vmul.f32 %v1949_v62, %v3245_v53  ;;  %v3276_v44 = vadd.f32 1.0, %v838_v35  ;;  %v1588_v63 = vadd.f32 1.0, %v1837_v16  ;;  %v1413_v24 = vsel %vm3248_vm12, %v1412_v48, %v1408_v33  ;;  %vm807_vm4 = vmor %vm805_vm14, %vm806_vm3 }
 0x1e2   :  { %v804_v61 = vadd.f32 %v1947_v45, %v803_v59  ;;  %v1475_v43 = vadd.f32 0.112945676, %v1474_v14  ;;  %v1414_v29 = vmul.f32 %v1413_v24, %v3024_v46  ;;  %v1510_v38 = vmul.f32 3.8918573e-05, %v2957_v55 }
 0x1e3   :  { %v1442_v19 = vsub.f32 1.0, %v1441_v11  ;;  %1950 = vrcp.f32 %v3276_v44  ;;  %v1620_v58 = vmul.f32 %v1588_v63, %v3516_v10  ;;  %vm1446_vm5 = vweird.f32 %v1949_v62 }
 0x1e4   :  { %v808_v40 = vsel %vm807_vm4, %v1947_v45, %v804_v61  ;;  %v910_v27 = vmul.f32 3.8918573e-05, %v3003_v52  ;;  %v1853_v37 = vclamps-f32 %v1414_v29, 1.0  ;;  %v1476_v46 = vmul.f32 %v1475_v43, %v2885_v2  ;;  %vm1447_vm7 = vmor %vm1445_vm1, %vm1446_vm5 }
 0x1e5   :  { %v813_v13 = vsel %vm3261_vm15, %v812_v21, %v808_v40  ;;  %v1443_v17 = vmul.f32 %v1949_v62, %v1442_v19  ;;  %1710 = vmatmul.f32.gmra.mxu1 %v1620_v58  ;;  %vm3292_vm6 = vcmp.eq.f32.partialorder %v1449_v0, 8.507059e+37  ;;  %v1452_v60 = vor.u32 1.1754944e-38, %v1451_v1  ;;  %v3519_v21 = vld [vmem:[#allocation23_spill] sm:$0xff] }
 0x1e6   :  { %v814_v25 = vmul.f32 %v813_v13, %v3080_v30  ;;  %v873_v48 = vadd.f32 0.014752088, %v872_v3  ;;  %v1604_v12 = vadd.f32 1.0, %v1853_v37  ;;  %v1477_v57 = vadd.f32 0.4994258, %v1476_v46 }
 0x1e7   :  { %v1444_v45 = vadd.f32 %v1949_v62, %v1443_v17  ;;  %v1511_v20 = vadd.f32 0.001143296, %v1510_v38  ;;  %v911_v49 = vadd.f32 0.001143296, %v910_v27  ;;  %v1550_v30 = vmul.f32 3.8918573e-05, %v3064_v18 }
 0x1e8   :  { %v1838_v41 = vclamps-f32 %v814_v25, 1.0  ;;  %v874_v42 = vmul.f32 %v873_v48, %v2937_v47  ;;  %v1636_v23 = vmul.f32 %v1604_v12, %v3519_v21  ;;  %v1478_v51 = vmul.f32 %v1477_v57, %v2885_v2 }
 0x1e9   :  { %v1951_v50 = vpop.eup %1950  ;;  %v1448_v31 = vsel %vm1447_vm7, %v1949_v62, %v1444_v45  ;;  %v1512_v5 = vmul.f32 %v1511_v20, %v2957_v55  ;;  %v1543_v8 = vmul.f32 %v3227_v26, %v3064_v18  ;;  %v912_v16 = vmul.f32 %v911_v49, %v3003_v52 }
 0x1ea   :  { %v1589_v39 = vadd.f32 1.0, %v1838_v41  ;;  %v1453_v53 = vsel %vm3292_vm6, %v1452_v60, %v1448_v31  ;;  %v841_v6 = vmul.f32 %v1951_v50, %v3276_v44  ;;  %1758 = vmatmul.f32.gmra.mxu3 %v1636_v23  ;;  %v3310_v0 = vadd.f32 1.0, %v1478_v51  ;;  %v3344_v23 = vld [vmem:[%s3444_s4] ss:$0 sm:$0xff]  ;;  %s2070_s4 = smov [#allocation8]  }
 0x1eb   :  { %v1454_v15 = vmul.f32 %v1453_v53, %v3089_v56  ;;  %v875_v1 = vadd.f32 0.112945676, %v874_v42  ;;  %v1513_v35 = vadd.f32 0.014752088, %v1512_v5  ;;  %v1551_v59 = vadd.f32 0.001143296, %v1550_v30 }
 0x1ec   :  { %v1621_v2 = vmul.f32 %v1589_v39, %v2888_v4  ;;  %v842_v62 = vsub.f32 1.0, %v841_v6  ;;  %v849_v14 = vand.u32 2147483647, %v3276_v44  ;;  %v851_v33 = vand.u32 2147483648, %v3276_v44  ;;  %s1810_s12 = sshll.u32 %s2070_s4, 4  ;;  %s1811_s12 = int_to_ptr.vmem [resolvable:$true] %s1810_s12 }
 0x1ed   :  { %v1854_v26 = vclamps-f32 %v1454_v15, 1.0  ;;  %1952 = vrcp.f32 %v3310_v0  ;;  %vm846_vm8 = vweird.f32 %v1951_v50  ;;  %v876_v56 = vmul.f32 %v875_v1, %v2937_v47 }
 0x1ee   :  { %1713 = vmatmul.f32.gmra.mxu1 %v1621_v2  ;;  %v843_v11 = vmul.f32 %v1951_v50, %v842_v62  ;;  %v1514_v3 = vmul.f32 %v1513_v35, %v2957_v55  ;;  %v1544_v63 = vadd.f32 0.05243302, %v1543_v8  ;;  %v913_v24 = vadd.f32 0.014752088, %v912_v16  ;;  %v3520_v16 = vld [vmem:[#allocation16_spill] sm:$0xff] }
 0x1ef   :  { %v1605_v4 = vadd.f32 1.0, %v1854_v26  ;;  %v1552_v61 = vmul.f32 %v1551_v59, %v3064_v18  ;;  %vm845_vm9 = vweird.f32 %v3276_v44  ;;  %v877_v29 = vadd.f32 0.4994258, %v876_v56  ;;  %v3521_v26 = vld [vmem:[#allocation21_spill] sm:$0xff] }
 0x1f0   :  { %v844_v43 = vadd.f32 %v1951_v50, %v843_v11  ;;  %v1515_v19 = vadd.f32 0.112945676, %v1514_v3  ;;  %vm847_vm10 = vmor %vm845_vm9, %vm846_vm8  ;;  %v852_v10 = vor.u32 1.1754944e-38, %v851_v33  ;;  %v914_v58 = vmul.f32 %v913_v24, %v3003_v52 }
 0x1f1   :  { %v1637_v38 = vmul.f32 %v1605_v4, %v3008_v34  ;;  %v1553_v40 = vadd.f32 0.014752088, %v1552_v61  ;;  %vm850_vm11 = vcmp.eq.f32.partialorder %v849_v14, 8.507059e+37  ;;  %v878_v37 = vmul.f32 %v877_v29, %v2937_v47  ;;  %v3522_v4 = vld [vmem:[#allocation17_spill] sm:$0xff] }
 0x1f2   :  { %v848_v27 = vsel %vm847_vm10, %v1951_v50, %v844_v43  ;;  %v1516_v13 = vmul.f32 %v1515_v19, %v2957_v55  ;;  %v867_v46 = vmul.f32 %v3213_v54, %v2937_v47  ;;  %v915_v25 = vadd.f32 0.112945676, %v914_v58  ;;  %v1678_v50 = vpop.f32.mrf.mxu1 }
 0x1f3   :  { %v1953_v17 = vpop.eup %1952  ;;  %1761 = vmatmul.f32.gmra.mxu3 %v1637_v38  ;;  %v853_v44 = vsel %vm850_vm11, %v852_v10, %v848_v27  ;;  %v1554_v34 = vmul.f32 %v1553_v40, %v3064_v18  ;;  %v1507_v7 = vmul.f32 %v3216_v36, %v2957_v55  ;;  %v3332_v12 = vadd.f32 1.0, %v878_v37 }
 0x1f4   :  { %v854_v60 = vmul.f32 %v853_v44, %v3097_v32  ;;  %v1481_v48 = vmul.f32 %v1953_v17, %v3310_v0  ;;  %v906_v45 = vadd.f32 0.18741608, %v3222_v22  ;;  %v1517_v57 = vadd.f32 0.4994258, %v1516_v13  ;;  %v3523_v13 = vld [vmem:[#allocation24_spill] sm:$0xff] }
 0x1f5   :  { %v916_v20 = vmul.f32 %v915_v25, %v3003_v52  ;;  %v1555_v47 = vadd.f32 0.112945676, %v1554_v34  ;;  %v1545_v54 = vmul.f32 %v1544_v63, %v3064_v18  ;;  %1954 = vrcp.f32 %v3332_v12 }
 0x1f6   :  { %v1839_v41 = vclamps-f32 %v854_v60, 1.0  ;;  %v1482_v42 = vsub.f32 1.0, %v1481_v48  ;;  %v1489_v36 = vand.u32 2147483647, %v3310_v0  ;;  %v1491_v32 = vand.u32 2147483648, %v3310_v0 }
 0x1f7   :  { %v1518_v49 = vmul.f32 %v1517_v57, %v2957_v55  ;;  %v917_v30 = vadd.f32 0.4994258, %v916_v20  ;;  %vm1486_vm12 = vweird.f32 %v1953_v17  ;;  %v1556_v31 = vmul.f32 %v1555_v47, %v3064_v18 }
 0x1f8   :  { %v1590_v21 = vadd.f32 1.0, %v1839_v41  ;;  %v1483_v22 = vmul.f32 %v1953_v17, %v1482_v42  ;;  %v907_v51 = vmul.f32 %v906_v45, %v3003_v52  ;;  %vm1485_vm13 = vweird.f32 %v3310_v0 }
 0x1f9   :  { %v3349_v5 = vadd.f32 1.0, %v1518_v49  ;;  %v918_v55 = vmul.f32 %v917_v30, %v3003_v52  ;;  %v1679_v53 = vadd.f32 %v3344_v23, %v1678_v50  ;;  %v1557_v6 = vadd.f32 0.4994258, %v1556_v31  ;;  %vm1487_vm14 = vmor %vm1485_vm13, %vm1486_vm12 }
 0x1fa   :  { %v1622_v8 = vmul.f32 %v1590_v21, %v3083_v9  ;;  %v1484_v39 = vadd.f32 %v1953_v17, %v1483_v22  ;;  %v868_v15 = vadd.f32 1.1283791, %v867_v46  ;;  %v1546_v1 = vadd.f32 0.18741608, %v1545_v54  ;;  %v1726_v9 = vpop.f32.mrf.mxu3  ;;  %v1681_v19 = vpop.f32.mrf.mxu1 }
 0x1fb   :  { %v1492_v35 = vor.u32 1.1754944e-38, %v1491_v32  ;;  %1956 = vrcp.f32 %v3349_v5  ;;  %v1955_v2 = vpop.eup %1954  ;;  %vm1490_vm15 = vcmp.eq.f32.partialorder %v1489_v36, 8.507059e+37  ;;  %v3355_v0 = vadd.f32 1.0, %v918_v55  ;;  %1774 = vst [vmem:[#allocation8] sm:$0xff] %v1679_v53 }
 0x1fc   :  { %1716 = vmatmul.f32.gmra.mxu1 %v1622_v8  ;;  %v1488_v62 = vsel %vm1487_vm14, %v1953_v17, %v1484_v39  ;;  %v1558_v52 = vmul.f32 %v1557_v6, %v3064_v18  ;;  %v262_v59 = vmul.f32 0.5, %v3520_v16  ;;  %v3360_v14 = vmul.f32 0.5, %v3521_v26  ;;  %v3524_v17 = vld [vmem:[#allocation25_spill] sm:$0xff] }
 0x1fd   :  { %v1493_v33 = vsel %vm1490_vm15, %v1492_v35, %v1488_v62  ;;  %v881_v11 = vmul.f32 %v1955_v2, %v3332_v12  ;;  %v1508_v56 = vadd.f32 1.1283791, %v1507_v7  ;;  %v908_v3 = vadd.f32 1.1283791, %v907_v51 }
 0x1fe   :  { %v1494_v63 = vmul.f32 %v1493_v33, %v3101_v28  ;;  %1958 = vrcp.f32 %v3355_v0  ;;  %v869_v24 = vmul.f32 %v868_v15, %v3522_v4  ;;  %v1547_v61 = vmul.f32 %v1546_v1, %v3064_v18 }
 0x1ff   :  { %v882_v43 = vsub.f32 1.0, %v881_v11  ;;  %v3367_v29 = vadd.f32 1.0, %v1558_v52  ;;  %v891_v10 = vand.u32 2147483648, %v3332_v12  ;;  %v1682_v58 = vadd.f32 %v3344_v23, %v1681_v19 }
 0x200   :  { %v1855_v38 = vclamps-f32 %v1494_v63, 1.0  ;;  %v1727_v40 = vadd.f32 %v3344_v23, %v1726_v9  ;;  %vm886_vm0 = vweird.f32 %v1955_v2  ;;  %v889_v28 = vand.u32 2147483647, %v3332_v12 }
 0x201   :  { %v1957_v27 = vpop.eup %1956  ;;  %v883_v37 = vmul.f32 %v1955_v2, %v882_v43  ;;  %1960 = vrcp.f32 %v3367_v29  ;;  %v1509_v18 = vmul.f32 %v1508_v56, %v3523_v13  ;;  %v3376_v46 = vmul.f32 %v908_v3, %v3524_v17  ;;  %1775 = vst [vmem:[#allocation8 + $0x8] sm:$0xff] %v1682_v58  ;;  %v3528_v43 = vld [vmem:[#allocation26_spill] sm:$0xff] }
 0x202   :  { %v1606_v44 = vadd.f32 1.0, %v1855_v38  ;;  %v1521_v25 = vmul.f32 %v1957_v27, %v3349_v5  ;;  %v1548_v34 = vadd.f32 1.1283791, %v1547_v61  ;;  %vm885_vm1 = vweird.f32 %v3332_v12  ;;  %1790 = vst [vmem:[#allocation8 + $0x80] sm:$0xff] %v1727_v40  ;;  %v1729_v54 = vpop.f32.mrf.mxu3  ;;  %v1684_v31 = vpop.f32.mrf.mxu1 }
 0x203   :  { %v884_v7 = vadd.f32 %v1955_v2, %v883_v37  ;;  %v1529_v60 = vand.u32 2147483647, %v3349_v5  ;;  %vm887_vm2 = vmor %vm885_vm1, %vm886_vm0  ;;  %v892_v57 = vor.u32 1.1754944e-38, %v891_v10  ;;  %v1531_v47 = vand.u32 2147483648, %v3349_v5 }
 0x204   :  { %v1959_v48 = vpop.eup %1958  ;;  %v1638_v45 = vmul.f32 %v1606_v44, %v262_v59  ;;  %v1522_v20 = vsub.f32 1.0, %v1521_v25  ;;  %vm890_vm3 = vcmp.eq.f32.partialorder %v889_v28, 8.507059e+37  ;;  %v931_v36 = vand.u32 2147483648, %v3355_v0 }
 0x205   :  { %v888_v41 = vsel %vm887_vm2, %v1955_v2, %v884_v7  ;;  %v921_v42 = vmul.f32 %v1959_v48, %v3355_v0  ;;  %vm1526_vm4 = vweird.f32 %v1957_v27  ;;  %v1730_v49 = vadd.f32 %v3344_v23, %v1729_v54 }
 0x206   :  { %1764 = vmatmul.f32.gmra.mxu3 %v1638_v45  ;;  %v893_v12 = vsel %vm890_vm3, %v892_v57, %v888_v41  ;;  %v1523_v32 = vmul.f32 %v1957_v27, %v1522_v20  ;;  %vm1525_vm5 = vweird.f32 %v3349_v5  ;;  %vm3387_vm6 = vcmp.eq.f32.partialorder %v1529_v60, 8.507059e+37  ;;  %v3530_v60 = vld [vmem:[#allocation20_spill] sm:$0xff] }
 0x207   :  { %v1961_v30 = vpop.eup %1960  ;;  %v894_v50 = vmul.f32 %v893_v12, %v869_v24  ;;  %v922_v22 = vsub.f32 1.0, %v921_v42  ;;  %v1532_v55 = vor.u32 1.1754944e-38, %v1531_v47  ;;  %v1685_v39 = vadd.f32 %v3344_v23, %v1684_v31  ;;  %1791 = vst [vmem:[#allocation8 + $0x88] sm:$0xff] %v1730_v49  ;;  %vm1527_vm7 = vmor %vm1525_vm5, %vm1526_vm4  ;;  %v3527_v24 = vld [vmem:[#allocation18_spill] sm:$0xff] }
 0x208   :  { %v1524_v51 = vadd.f32 %v1957_v27, %v1523_v32  ;;  %v1561_v8 = vmul.f32 %v1961_v30, %v3367_v29  ;;  %vm926_vm8 = vweird.f32 %v1959_v48  ;;  %v929_v15 = vand.u32 2147483647, %v3355_v0 }
 0x209   :  { %v1840_v53 = vclamps-f32 %v894_v50, 1.0  ;;  %v923_v6 = vmul.f32 %v1959_v48, %v922_v22  ;;  %vm925_vm9 = vweird.f32 %v3355_v0  ;;  %v932_v1 = vor.u32 1.1754944e-38, %v931_v36  ;;  %1776 = vst [vmem:[#allocation8 + $0x10] sm:$0xff] %v1685_v39 }
 0x20a   :  { %v1528_v5 = vsel %vm1527_vm7, %v1957_v27, %v1524_v51  ;;  %v1562_v35 = vsub.f32 1.0, %v1561_v8  ;;  %v1571_v9 = vand.u32 2147483648, %v3367_v29  ;;  %vm927_vm10 = vmor %vm925_vm9, %vm926_vm8  ;;  %vm1566_vm11 = vweird.f32 %v1961_v30  ;;  %v1732_v33 = vpop.f32.mrf.mxu3 }
 0x20b   :  { %v1591_v2 = vadd.f32 1.0, %v1840_v53  ;;  %v1533_v62 = vsel %vm3387_vm6, %v1532_v55, %v1528_v5  ;;  %v924_v52 = vadd.f32 %v1959_v48, %v923_v6  ;;  %v1569_v26 = vand.u32 2147483647, %v3367_v29 }
 0x20c   :  { %v1534_v16 = vmul.f32 %v1533_v62, %v1509_v18  ;;  %v1563_v59 = vmul.f32 %v1961_v30, %v1562_v35  ;;  %vm930_vm12 = vcmp.eq.f32.partialorder %v929_v15, 8.507059e+37  ;;  %v1733_v56 = vadd.f32 %v3344_v23, %v1732_v33  ;;  %v3529_v18 = vld [vmem:[#allocation19_spill] sm:$0xff] }
 0x20d   :  { %v1623_v11 = vmul.f32 %v1591_v2, %v3360_v14  ;;  %v928_v0 = vsel %vm927_vm10, %v1959_v48, %v924_v52  ;;  %vm1565_vm13 = vweird.f32 %v3367_v29  ;;  %v263_v61 = vmul.f32 0.5, %v3527_v24  ;;  %v1687_v14 = vpop.f32.mrf.mxu1 }
 0x20e   :  { %v1856_v3 = vclamps-f32 %v1534_v16, 1.0  ;;  %v933_v63 = vsel %vm930_vm12, %v932_v1, %v928_v0  ;;  %v1564_v4 = vadd.f32 %v1961_v30, %v1563_v59  ;;  %v1549_v19 = vmul.f32 %v1548_v34, %v3528_v43  ;;  %vm1567_vm14 = vmor %vm1565_vm13, %vm1566_vm11  ;;  %1792 = vst [vmem:[#allocation8 + $0x90] sm:$0xff] %v1733_v56 }
 0x20f   :  { %1719 = vmatmul.f32.gmra.mxu1 %v1623_v11  ;;  %v934_v38 = vmul.f32 %v933_v63, %v3376_v46  ;;  %v1572_v10 = vor.u32 1.1754944e-38, %v1571_v9  ;;  %vm1570_vm15 = vcmp.eq.f32.partialorder %v1569_v26, 8.507059e+37  ;;  %v1688_v27 = vadd.f32 %v3344_v23, %v1687_v14 }
 0x210   :  { %v1607_v58 = vadd.f32 1.0, %v1856_v3  ;;  %v1568_v40 = vsel %vm1567_vm14, %v1961_v30, %v1564_v4  ;;  %v248_v17 = vmul.f32 0.5, %v3529_v18  ;;  %v264_v48 = vmul.f32 0.5, %v3530_v60 }
 0x211   :  { %v1841_v37 = vclamps-f32 %v934_v38, 1.0  ;;  %v1573_v28 = vsel %vm1570_vm15, %v1572_v10, %v1568_v40  ;;  %1777 = vst [vmem:[#allocation8 + $0x18] sm:$0xff] %v1688_v27 }
 0x212   :  { %v1639_v29 = vmul.f32 %v1607_v58, %v263_v61  ;;  %v1574_v13 = vmul.f32 %v1573_v28, %v1549_v19  ;;  %v1735_v25 = vpop.f32.mrf.mxu3 }
 0x213   :  { %v1592_v44 = vadd.f32 1.0, %v1841_v37  ;;  %v1736_v7 = vadd.f32 %v3344_v23, %v1735_v25 }
 0x214   :  { %1767 = vmatmul.f32.gmra.mxu3 %v1639_v29  ;;  %v1857_v46 = vclamps-f32 %v1574_v13, 1.0 }
 0x215   :  { %v1624_v34 = vmul.f32 %v1592_v44, %v248_v17  ;;  %v1690_v57 = vpop.f32.mrf.mxu1  ;;  %1793 = vst [vmem:[#allocation8 + $0x98] sm:$0xff] %v1736_v7 }
 0x216   :  { %v1608_v45 = vadd.f32 1.0, %v1857_v46  ;;  %v1691_v47 = vadd.f32 %v3344_v23, %v1690_v57 }
 0x217   :  { %1722 = vmatmul.f32.gmra.mxu1 %v1624_v34 }
 0x218   :  { %v1640_v20 = vmul.f32 %v1608_v45, %v264_v48  ;;  %1778 = vst [vmem:[#allocation8 + $0x20] sm:$0xff] %v1691_v47 }
 0x21a   :  { %v1738_v54 = vpop.f32.mrf.mxu3 }
 0x21b   :  { %v1739_v41 = vadd.f32 %v3344_v23, %v1738_v54 }
 0x21c   :  { %1770 = vmatmul.f32.gmra.mxu3 %v1640_v20 }
 0x21d   :  { %v1693_v42 = vpop.f32.mrf.mxu1  ;;  %1794 = vst [vmem:[#allocation8 + $0xa0] sm:$0xff] %v1739_v41 }
 0x21e   :  { %v1694_v36 = vadd.f32 %v3344_v23, %v1693_v42 }
 0x220   :  { %1779 = vst [vmem:[#allocation8 + $0x28] sm:$0xff] %v1694_v36 }
 0x222   :  { %v1741_v12 = vpop.f32.mrf.mxu3 }
 0x223   :  { %v1742_v32 = vadd.f32 %v3344_v23, %v1741_v12 }
 0x225   :  { %v1696_v49 = vpop.f32.mrf.mxu1  ;;  %1795 = vst [vmem:[#allocation8 + $0xa8] sm:$0xff] %v1742_v32 }
 0x226   :  { %v1697_v30 = vadd.f32 %v3344_v23, %v1696_v49 }
 0x228   :  { %1780 = vst [vmem:[#allocation8 + $0x30] sm:$0xff] %v1697_v30 }
 0x22a   :  { %v1744_v50 = vpop.f32.mrf.mxu3 }
 0x22b   :  { %v1745_v21 = vadd.f32 %v3344_v23, %v1744_v50 }
 0x22d   :  { %v1699_v22 = vpop.f32.mrf.mxu1  ;;  %1796 = vst [vmem:[#allocation8 + $0xb0] sm:$0xff] %v1745_v21 }
 0x22e   :  { %v1700_v31 = vadd.f32 %v3344_v23, %v1699_v22 }
 0x230   :  { %1781 = vst [vmem:[#allocation8 + $0x38] sm:$0xff] %v1700_v31 }
 0x232   :  { %v1747_v51 = vpop.f32.mrf.mxu3 }
 0x233   :  { %v1748_v55 = vadd.f32 %v3344_v23, %v1747_v51 }
 0x235   :  { %v1702_v8 = vpop.f32.mrf.mxu1  ;;  %1797 = vst [vmem:[#allocation8 + $0xb8] sm:$0xff] %v1748_v55 }
 0x236   :  { %v1703_v39 = vadd.f32 %v3344_v23, %v1702_v8 }
 0x238   :  { %1782 = vst [vmem:[#allocation8 + $0x40] sm:$0xff] %v1703_v39 }
 0x23a   :  { %v1750_v53 = vpop.f32.mrf.mxu3 }
 0x23b   :  { %v1751_v6 = vadd.f32 %v3344_v23, %v1750_v53 }
 0x23d   :  { %1798 = vst [vmem:[#allocation8 + $0xc0] sm:$0xff] %v1751_v6 }
 0x246   :  { %v1705_v15 = vpop.f32.mrf.mxu1 }
 0x247   :  { %v1706_v5 = vadd.f32 %v3344_v23, %v1705_v15 }
 0x249   :  { %1783 = vst [vmem:[#allocation8 + $0x48] sm:$0xff] %v1706_v5 }
 0x24f   :  { %v1708_v1 = vpop.f32.mrf.mxu1 }
 0x250   :  { %v1709_v35 = vadd.f32 %v3344_v23, %v1708_v1 }
 0x252   :  { %1784 = vst [vmem:[#allocation8 + $0x50] sm:$0xff] %v1709_v35  ;;  %v1753_v2 = vpop.f32.mrf.mxu3 }
 0x253   :  { %v1754_v62 = vadd.f32 %v3344_v23, %v1753_v2 }
 0x255   :  { %1799 = vst [vmem:[#allocation8 + $0xc8] sm:$0xff] %v1754_v62 }
 0x25c   :  { %v1756_v52 = vpop.f32.mrf.mxu3 }
 0x25d   :  { %v1757_v9 = vadd.f32 %v3344_v23, %v1756_v52 }
 0x25f   :  { %1800 = vst [vmem:[#allocation8 + $0xd0] sm:$0xff] %v1757_v9 }
 0x262   :  { %v1711_v16 = vpop.f32.mrf.mxu1 }
 0x263   :  { %v1712_v59 = vadd.f32 %v3344_v23, %v1711_v16 }
 0x265   :  { %1785 = vst [vmem:[#allocation8 + $0x58] sm:$0xff] %v1712_v59 }
 0x26b   :  { %v1714_v26 = vpop.f32.mrf.mxu1 }
 0x26c   :  { %v1715_v33 = vadd.f32 %v3344_v23, %v1714_v26 }
 0x26d   :  { %v1759_v11 = vpop.f32.mrf.mxu3 }
 0x26e   :  { %1786 = vst [vmem:[#allocation8 + $0x60] sm:$0xff] %v1715_v33  ;;  %v1760_v0 = vadd.f32 %v3344_v23, %v1759_v11 }
 0x270   :  { %1801 = vst [vmem:[#allocation8 + $0xd8] sm:$0xff] %v1760_v0 }
 0x276   :  { %v1762_v56 = vpop.f32.mrf.mxu3 }
 0x277   :  { %v1763_v3 = vadd.f32 %v3344_v23, %v1762_v56 }
 0x279   :  { %v1717_v63 = vpop.f32.mrf.mxu1  ;;  %1802 = vst [vmem:[#allocation8 + $0xe0] sm:$0xff] %v1763_v3 }
 0x27a   :  { %v1718_v4 = vadd.f32 %v3344_v23, %v1717_v63 }
 0x27c   :  { %1787 = vst [vmem:[#allocation8 + $0x68] sm:$0xff] %v1718_v4 }
 0x289   :  { %v1765_v24 = vpop.f32.mrf.mxu3 }
 0x28a   :  { %v1766_v61 = vadd.f32 %v3344_v23, %v1765_v24 }
 0x28c   :  { %v1720_v43 = vpop.f32.mrf.mxu1  ;;  %1803 = vst [vmem:[#allocation8 + $0xe8] sm:$0xff] %v1766_v61 }
 0x28d   :  { %v1721_v19 = vadd.f32 %v3344_v23, %v1720_v43 }
 0x28f   :  { %1788 = vst [vmem:[#allocation8 + $0x70] sm:$0xff] %v1721_v19 }
 0x294   :  { %v1723_v38 = vpop.f32.mrf.mxu1 }
 0x295   :  { %v1724_v10 = vadd.f32 %v3344_v23, %v1723_v38 }
 0x297   :  { %1789 = vst [vmem:[#allocation8 + $0x78] sm:$0xff] %v1724_v10  ;;  %v1768_v14 = vpop.f32.mrf.mxu3 }
 0x298   :  { %v1769_v58 = vadd.f32 %v3344_v23, %v1768_v14 }
 0x29a   :  { %1804 = vst [vmem:[#allocation8 + $0xf0] sm:$0xff] %v1769_v58 }
 0x29f   :  { %v1771_v40 = vpop.f32.mrf.mxu3 }
 0x2a0   :  { %v1772_v27 = vadd.f32 %v3344_v23, %v1771_v40 }
 0x2a2   :  { %1805 = vst [vmem:[#allocation8 + $0xf8] sm:$0xff] %v1772_v27 }
 0x2a3   :  { %1818 = dma.vmem_to_hbm [thread:$0]  %s1811_s12, 4096, %s1813_s15, [#allocation4], %s2066_s26, %s2066_s26, %s2067_s27  }
 0x2a4   :  { %2063 = dma.done.wait [#allocation4], 4096  }
 0x2a5   :  { %2064 = vsyncadd [#allocation4], 4294963200 }
 0x2a6   :  { %1823 = vsyncpa [#allocation3], 1 }
 0x2a7   :  { %1824 = vsyncpa [#allocation6], 1 }
 0x2a8   :  { %1825 = vsyncpa [#allocation4], 1 }

</bundles_post_ra>
